<compile_context>
chip_gen: v7x
topology: tpu7x:2x2x1
jax: 0.10.0
libtpu: 0.0.40
codegen_flags: <defaults>
</compile_context>

<pallas_src>
import functools

import jax
import jax.numpy as jnp
import numpy as np
from jax.experimental import pallas as pl
from jax.experimental.pallas import tpu as pltpu

LN_EPS = 1e-5  # PyTorch nn.LayerNorm default eps
LANE = 128


def _round_up(x, m):
    return ((x + m - 1) // m) * m


# ---------------------------------------------------------------------------
# Pallas kernel: two independent MLP stacks sharing one input row tile.
#   [Linear -> LayerNorm -> ReLU] x2 -> Linear   (applied twice, A and B)
# ---------------------------------------------------------------------------
def _ln_relu(h, g, be):
    mu = jnp.mean(h, axis=-1, keepdims=True)
    var = jnp.mean((h - mu) ** 2, axis=-1, keepdims=True)
    h = (h - mu) * jax.lax.rsqrt(var + LN_EPS) * g + be
    return jnp.maximum(h, 0.0)


def _mlp_stack(x, w1, b1, g1, be1, w2, b2, g2, be2, w3, b3):
    # TODO(synk): optionally cast matmul inputs to bf16 (f32 accumulate) for
    # 2x MXU throughput; kept f32 here so the 1e-4 correctness check holds.
    h = jnp.dot(x, w1[...], preferred_element_type=jnp.float32) + b1[...]
    h = _ln_relu(h, g1[...], be1[...])
    h = jnp.dot(h, w2[...], preferred_element_type=jnp.float32) + b2[...]
    h = _ln_relu(h, g2[...], be2[...])
    return jnp.dot(h, w3[...], preferred_element_type=jnp.float32) + b3[...]


def dual_mlp_kernel(x_ref,
                    aw1, ab1, ag1, abe1, aw2, ab2, ag2, abe2, aw3, ab3,
                    bw1, bb1, bg1, bbe1, bw2, bb2, bg2, bbe2, bw3, bb3,
                    o_ref):
    x = x_ref[...].astype(jnp.float32)
    out_a = _mlp_stack(x, aw1, ab1, ag1, abe1, aw2, ab2, ag2, abe2, aw3, ab3)
    out_b = _mlp_stack(x, bw1, bb1, bg1, bbe1, bw2, bb2, bg2, bbe2, bw3, bb3)
    da = out_a.shape[-1]          # multiple of 128 -> both stores lane-dense
    o_ref[:, :da] = out_a.astype(o_ref.dtype)
    o_ref[:, da:] = out_b.astype(o_ref.dtype)


# ---------------------------------------------------------------------------
# Wrapper
# ---------------------------------------------------------------------------
def dual_mlp_apply(x2d, params_a, params_b, tm=256):
    """x2d: (R, Din_pad) with Din_pad % 128 == 0 (already lane-padded).

    Returns (R, DoutA_pad + DoutB_pad) where Dout*_pad are the (padded)
    output widths of the two MLPs.
    """
    R, din = x2d.shape
    assert din % LANE == 0, "input feature dim must be lane-padded"
    dout_a = params_a[-1].shape[-1]
    dout_b = params_b[-1].shape[-1]
    dout = dout_a + dout_b
    tm = min(tm, _round_up(R, 8))            # don't blow up tiny problems

    row_map = lambda i: (i, 0)
    weight_specs = [pl.BlockSpec(p.shape, lambda i: (0, 0))
                    for p in (*params_a, *params_b)]

    return pl.pallas_call(
        dual_mlp_kernel,
        out_shape=jax.ShapeDtypeStruct((R, dout), jnp.float32),
        grid=(pl.cdiv(R, tm),),
        in_specs=[pl.BlockSpec((tm, din), row_map)] + weight_specs,
        out_specs=pl.BlockSpec((tm, dout), row_map),
        compiler_params=pltpu.CompilerParams(dimension_semantics=("parallel",)),
    )(x2d, *params_a, *params_b)


# ---------------------------------------------------------------------------
# Parameter construction & lane padding
# ---------------------------------------------------------------------------
def init_mlp_params(key, dims):
    """dims = [d_in, h1, h2, d_out]; weights stored (in, out)."""
    d_in, h1, h2, d_out = dims
    ks = jax.random.split(key, 6)
    scale = 0.05
    w1 = scale * jax.random.normal(ks[0], (d_in, h1), jnp.float32)
    b1 = scale * jax.random.normal(ks[1], (1, h1), jnp.float32)
    g1 = jnp.ones((1, h1), jnp.float32)
    be1 = jnp.zeros((1, h1), jnp.float32)
    w2 = scale * jax.random.normal(ks[2], (h1, h2), jnp.float32)
    b2 = scale * jax.random.normal(ks[3], (1, h2), jnp.float32)
    g2 = jnp.ones((1, h2), jnp.float32)
    be2 = jnp.zeros((1, h2), jnp.float32)
    w3 = scale * jax.random.normal(ks[4], (h2, d_out), jnp.float32)
    b3 = scale * jax.random.normal(ks[5], (1, d_out), jnp.float32)
    return (w1, b1, g1, be1, w2, b2, g2, be2, w3, b3)


def pad_mlp_params(raw, din_pad, in_offset, dout_pad):
    """Zero-pad w1 rows (placing the real rows at `in_offset`) and w3/b3 cols.

    Exactly equivalent: padded input columns are zero and the padded output
    columns are sliced off by the caller.
    """
    w1, b1, g1, be1, w2, b2, g2, be2, w3, b3 = raw
    d_in, h1 = w1.shape
    assert h1 % LANE == 0 and w2.shape[1] % LANE == 0, \
        "hidden dims must be multiples of 128 (LayerNorm runs over them)"
    w1p = jnp.zeros((din_pad, h1), w1.dtype).at[in_offset:in_offset + d_in, :].set(w1)
    d_out = w3.shape[1]
    w3p = jnp.pad(w3, ((0, 0), (0, dout_pad - d_out)))
    b3p = jnp.pad(b3, ((0, 0), (0, dout_pad - d_out)))
    return (w1p, b1, g1, be1, w2, b2, g2, be2, w3p, b3p)


# ---------------------------------------------------------------------------
# Full forward (Pallas for the fused MLP pairs, JAX glue elsewhere)
# ---------------------------------------------------------------------------
def dual_encoder_decoder_forward(raw_params, obs, mask_fwd, mask_inv, x_tar, p1,
                                 *, d_x, d_y1, d_y2, mode, tm=256):
    B, n_obs, d_obs = obs.shape
    n_tar = x_tar.shape[1]
    enc1, enc2, dec1, dec2 = raw_params
    final_dim = enc1[-1].shape[-1]               # 256

    # ---- fused encoders: one lane-padded obs slab feeds both stacks --------
    d_obs_pad = _round_up(d_obs, LANE)
    obs_pad = jnp.pad(obs.reshape(B * n_obs, d_obs),
                      ((0, 0), (0, d_obs_pad - d_obs)))
    enc_out_pad = _round_up(final_dim, LANE)
    enc1_p = pad_mlp_params(enc1, d_obs_pad, 0, enc_out_pad)            # obs_f cols
    enc2_p = pad_mlp_params(enc2, d_obs_pad, d_x + d_y1, enc_out_pad)   # obs_i cols
    r12 = dual_mlp_apply(obs_pad, enc1_p, enc2_p, tm=tm).reshape(B, n_obs, -1)
    r1 = r12[:, :, :final_dim]
    r2 = r12[:, :, enc_out_pad:enc_out_pad + final_dim]

    # ---- masked mean: plain JAX (tiny matvec; Pallas call not worth it) ----
    def masked_mean(mask, r):
        colsum = jnp.sum(mask, axis=1)                       # (B, n_obs)
        agg = jnp.einsum("bn,bnd->bd", colsum, r)            # (B, 256)
        return agg / (jnp.sum(mask, axis=(1, 2))[:, None] + 1e-10)

    L1 = masked_mean(mask_fwd, r1)
    L2 = masked_mean(mask_inv, r2)

    if mode == 0:
        lat = L1 * p1 + L2 * (1.0 - p1)
    elif mode == 1:
        lat = L1
    else:
        lat = L2
    latent = jnp.broadcast_to(lat[:, None, :], (B, n_tar, final_dim))

    # ---- fused decoders: build the lane-padded [latent | x_tar | 0] slab ---
    dec_in = final_dim + d_x
    dec_in_pad = _round_up(dec_in, LANE)
    concat = jnp.concatenate(
        [latent, x_tar,
         jnp.zeros((B, n_tar, dec_in_pad - dec_in), latent.dtype)], axis=-1)
    flat = concat.reshape(B * n_tar, dec_in_pad)

    d1_out = dec1[-1].shape[-1]                  # 2*d_y1
    d2_out = dec2[-1].shape[-1]                  # 2*d_y2
    d1_pad = _round_up(d1_out, LANE)
    d2_pad = _round_up(d2_out, LANE)
    dec1_p = pad_mlp_params(dec1, dec_in_pad, 0, d1_pad)
    dec2_p = pad_mlp_params(dec2, dec_in_pad, 0, d2_pad)
    out12 = dual_mlp_apply(flat, dec1_p, dec2_p, tm=tm).reshape(B, n_tar, -1)
    out1 = out12[:, :, :d1_out]
    out2 = out12[:, :, d1_pad:d1_pad + d2_out]
    return jnp.concatenate([out1, out2], axis=-1)


# ---------------------------------------------------------------------------
# Pure-JAX reference (correctness check only)
# ---------------------------------------------------------------------------
def _mlp_ref(x, params):
    w1, b1, g1, be1, w2, b2, g2, be2, w3, b3 = params

    def ln(h, g, be):
        mu = h.mean(-1, keepdims=True)
        var = ((h - mu) ** 2).mean(-1, keepdims=True)
        return (h - mu) / jnp.sqrt(var + LN_EPS) * g + be

    h = jax.nn.relu(ln(x @ w1 + b1, g1, be1))
    h = jax.nn.relu(ln(h @ w2 + b2, g2, be2))
    return h @ w3 + b3


def _forward_ref(params, obs, mask_fwd, mask_inv, x_tar, d_x, d_y1, d_y2, mode, p1):
    enc1, enc2, dec1, dec2 = params
    obs_f = obs[:, :, : d_x + d_y1]
    obs_i = obs[:, :, d_x + d_y1: 2 * d_x + d_y1 + d_y2]
    r1 = _mlp_ref(obs_f, enc1)
    r2 = _mlp_ref(obs_i, enc2)
    L1 = jnp.einsum("bmn,bnd->bmd", mask_fwd, r1).sum(1) / (
        mask_fwd.sum((1, 2))[:, None] + 1e-10)
    L2 = jnp.einsum("bmn,bnd->bmd", mask_inv, r2).sum(1) / (
        mask_inv.sum((1, 2))[:, None] + 1e-10)
    n_tar = x_tar.shape[1]
    L1 = jnp.broadcast_to(L1[:, None, :], (L1.shape[0], n_tar, L1.shape[-1]))
    L2 = jnp.broadcast_to(L2[:, None, :], (L2.shape[0], n_tar, L2.shape[-1]))
    latent = L1 * p1 + L2 * (1.0 - p1) if mode == 0 else (L1 if mode == 1 else L2)
    concat = jnp.concatenate((latent, x_tar), axis=-1)
    return jnp.concatenate((_mlp_ref(concat, dec1), _mlp_ref(concat, dec2)), axis=-1)


# ---------------------------------------------------------------------------
if __name__ == "__main__":
    d_x, d_y1, d_y2 = 1, 3, 5
    enc_hidden = [128, 128]
    dec_hidden = [128, 128]
    final_enc = 256
    B, n_obs, n_tar = 2, 8, 8

    key = jax.random.PRNGKey(0)
    k_p, k_obs, k_tar, k_m1, k_m2, k_e1, k_e2, k_d1, k_d2 = jax.random.split(key, 9)

    enc1_dims = [d_x + d_y1] + enc_hidden + [final_enc]
    enc2_dims = [d_x + d_y2] + enc_hidden + [final_enc]
    dec1_dims = [d_x + final_enc] + dec_hidden + [d_y1 * 2]
    dec2_dims = [d_x + final_enc] + dec_hidden + [d_y2 * 2]

    params = (
        init_mlp_params(k_e1, enc1_dims),
        init_mlp_params(k_e2, enc2_dims),
        init_mlp_params(k_d1, dec1_dims),
        init_mlp_params(k_d2, dec2_dims),
    )

    obs = jax.random.normal(k_obs, (B, n_obs, 2 * d_x + d_y1 + d_y2), jnp.float32)
    x_tar = jax.random.normal(k_tar, (B, n_tar, d_x), jnp.float32)
    mask_fwd = jax.random.bernoulli(k_m1, 0.6, (B, n_obs, n_obs)).astype(jnp.float32)
    mask_inv = jax.random.bernoulli(k_m2, 0.6, (B, n_obs, n_obs)).astype(jnp.float32)

    # TODO(synk): MODE==0 blend weight comes from torch.rand in the original;
    # replaced with a deterministic jax.random draw.
    pr = jax.random.uniform(k_p, (2,), jnp.float32)
    p1 = pr[0] / (pr[0] + pr[1])
    MODE = 0

    fwd = jax.jit(functools.partial(
        dual_encoder_decoder_forward,
        d_x=d_x, d_y1=d_y1, d_y2=d_y2, mode=MODE, tm=256))
    out = fwd(params, obs, mask_fwd, mask_inv, x_tar, p1)
    out = jax.block_until_ready(out)

    ref = _forward_ref(params, obs, mask_fwd, mask_inv, x_tar,
                       d_x, d_y1, d_y2, MODE, p1)
    np.testing.assert_allclose(np.asarray(out), np.asarray(ref),
                               atol=1e-4, rtol=1e-4)
    assert out.shape == (B, n_tar, 2 * d_y1 + 2 * d_y2)
    print("KERNEL_OK")
</pallas_src>

<mosaic_0001>
module attributes {stable_mosaic.version = 11 : i64} {
  func.func @dual_mlp_kernel(%arg0: i32, %arg1: memref<16x128xf32, #tpu.memory_space<vmem>>, %arg2: memref<128x128xf32, #tpu.memory_space<vmem>>, %arg3: memref<1x128xf32, #tpu.memory_space<vmem>>, %arg4: memref<1x128xf32, #tpu.memory_space<vmem>>, %arg5: memref<1x128xf32, #tpu.memory_space<vmem>>, %arg6: memref<128x128xf32, #tpu.memory_space<vmem>>, %arg7: memref<1x128xf32, #tpu.memory_space<vmem>>, %arg8: memref<1x128xf32, #tpu.memory_space<vmem>>, %arg9: memref<1x128xf32, #tpu.memory_space<vmem>>, %arg10: memref<128x256xf32, #tpu.memory_space<vmem>>, %arg11: memref<1x256xf32, #tpu.memory_space<vmem>>, %arg12: memref<128x128xf32, #tpu.memory_space<vmem>>, %arg13: memref<1x128xf32, #tpu.memory_space<vmem>>, %arg14: memref<1x128xf32, #tpu.memory_space<vmem>>, %arg15: memref<1x128xf32, #tpu.memory_space<vmem>>, %arg16: memref<128x128xf32, #tpu.memory_space<vmem>>, %arg17: memref<1x128xf32, #tpu.memory_space<vmem>>, %arg18: memref<1x128xf32, #tpu.memory_space<vmem>>, %arg19: memref<1x128xf32, #tpu.memory_space<vmem>>, %arg20: memref<128x256xf32, #tpu.memory_space<vmem>>, %arg21: memref<1x256xf32, #tpu.memory_space<vmem>>, %arg22: memref<16x512xf32, #tpu.memory_space<vmem>>) attributes {dimension_semantics = [#tpu.dimension_semantics<parallel>], iteration_bounds = array<i64: 1>, scalar_prefetch = 0 : i64, scratch_operands = 0 : i64, tpu.core_type = #tpu.core_type<tc>, window_params = [{transform_indices = @transform_0, window_bounds = array<i64: 16, 128>}, {pipeline_mode = #tpu.pipeline_mode<synchronous>, transform_indices = @transform_1, window_bounds = array<i64: 128, 128>}, {pipeline_mode = #tpu.pipeline_mode<synchronous>, transform_indices = @transform_2, window_bounds = array<i64: 1, 128>}, {pipeline_mode = #tpu.pipeline_mode<synchronous>, transform_indices = @transform_3, window_bounds = array<i64: 1, 128>}, {pipeline_mode = #tpu.pipeline_mode<synchronous>, transform_indices = @transform_4, window_bounds = array<i64: 1, 128>}, {pipeline_mode = #tpu.pipeline_mode<synchronous>, transform_indices = @transform_5, window_bounds = array<i64: 128, 128>}, {pipeline_mode = #tpu.pipeline_mode<synchronous>, transform_indices = @transform_6, window_bounds = array<i64: 1, 128>}, {pipeline_mode = #tpu.pipeline_mode<synchronous>, transform_indices = @transform_7, window_bounds = array<i64: 1, 128>}, {pipeline_mode = #tpu.pipeline_mode<synchronous>, transform_indices = @transform_8, window_bounds = array<i64: 1, 128>}, {pipeline_mode = #tpu.pipeline_mode<synchronous>, transform_indices = @transform_9, window_bounds = array<i64: 128, 256>}, {pipeline_mode = #tpu.pipeline_mode<synchronous>, transform_indices = @transform_10, window_bounds = array<i64: 1, 256>}, {pipeline_mode = #tpu.pipeline_mode<synchronous>, transform_indices = @transform_11, window_bounds = array<i64: 128, 128>}, {pipeline_mode = #tpu.pipeline_mode<synchronous>, transform_indices = @transform_12, window_bounds = array<i64: 1, 128>}, {pipeline_mode = #tpu.pipeline_mode<synchronous>, transform_indices = @transform_13, window_bounds = array<i64: 1, 128>}, {pipeline_mode = #tpu.pipeline_mode<synchronous>, transform_indices = @transform_14, window_bounds = array<i64: 1, 128>}, {pipeline_mode = #tpu.pipeline_mode<synchronous>, transform_indices = @transform_15, window_bounds = array<i64: 128, 128>}, {pipeline_mode = #tpu.pipeline_mode<synchronous>, transform_indices = @transform_16, window_bounds = array<i64: 1, 128>}, {pipeline_mode = #tpu.pipeline_mode<synchronous>, transform_indices = @transform_17, window_bounds = array<i64: 1, 128>}, {pipeline_mode = #tpu.pipeline_mode<synchronous>, transform_indices = @transform_18, window_bounds = array<i64: 1, 128>}, {pipeline_mode = #tpu.pipeline_mode<synchronous>, transform_indices = @transform_19, window_bounds = array<i64: 128, 256>}, {pipeline_mode = #tpu.pipeline_mode<synchronous>, transform_indices = @transform_20, window_bounds = array<i64: 1, 256>}, {transform_indices = @transform_21, window_bounds = array<i64: 16, 512>}]} {
    %c0 = arith.constant 0 : index
    %c0_0 = arith.constant 0 : index
    %0 = vector.load %arg1[%c0, %c0_0] : memref<16x128xf32, #tpu.memory_space<vmem>>, vector<16x128xf32>
    %c0_1 = arith.constant 0 : index
    %c0_2 = arith.constant 0 : index
    %1 = vector.load %arg2[%c0_1, %c0_2] : memref<128x128xf32, #tpu.memory_space<vmem>>, vector<128x128xf32>
    %cst = arith.constant dense<0.000000e+00> : vector<16x128xf32>
    %2 = tpu.matmul %0, %1, %cst {dimension_numbers = #tpu.dot_dimension_numbers<[1], [0], [0], [1], [0, 0, 1, 1], [], []>} : vector<16x128xf32>, vector<128x128xf32>, vector<16x128xf32> -> vector<16x128xf32>
    %c0_3 = arith.constant 0 : index
    %c0_4 = arith.constant 0 : index
    %3 = vector.load %arg3[%c0_3, %c0_4] : memref<1x128xf32, #tpu.memory_space<vmem>>, vector<1x128xf32>
    %4 = vector.broadcast %3 : vector<1x128xf32> to vector<16x128xf32>
    %5 = arith.addf %2, %4 : vector<16x128xf32>
    %c0_5 = arith.constant 0 : index
    %c0_6 = arith.constant 0 : index
    %6 = vector.load %arg4[%c0_5, %c0_6] : memref<1x128xf32, #tpu.memory_space<vmem>>, vector<1x128xf32>
    %c0_7 = arith.constant 0 : index
    %c0_8 = arith.constant 0 : index
    %7 = vector.load %arg5[%c0_7, %c0_8] : memref<1x128xf32, #tpu.memory_space<vmem>>, vector<1x128xf32>
    %cst_9 = arith.constant dense<0.000000e+00> : vector<16xf32>
    %8 = vector.multi_reduction <add>, %5, %cst_9 [1] : vector<16x128xf32> to vector<16xf32>
    %9 = vector.shape_cast %8 : vector<16xf32> to vector<16x1xf32>
    %cst_10 = arith.constant 1.280000e+02 : f32
    %10 = vector.broadcast %cst_10 : f32 to vector<16x1xf32>
    %11 = arith.divf %9, %10 : vector<16x1xf32>
    %12 = vector.broadcast %11 : vector<16x1xf32> to vector<16x128xf32>
    %13 = arith.subf %5, %12 : vector<16x128xf32>
    %14 = arith.mulf %13, %13 : vector<16x128xf32>
    %cst_11 = arith.constant dense<0.000000e+00> : vector<16xf32>
    %15 = vector.multi_reduction <add>, %14, %cst_11 [1] : vector<16x128xf32> to vector<16xf32>
    %16 = vector.shape_cast %15 : vector<16xf32> to vector<16x1xf32>
    %cst_12 = arith.constant 1.280000e+02 : f32
    %17 = vector.broadcast %cst_12 : f32 to vector<16x1xf32>
    %18 = arith.divf %16, %17 : vector<16x1xf32>
    %19 = vector.broadcast %11 : vector<16x1xf32> to vector<16x128xf32>
    %20 = arith.subf %5, %19 : vector<16x128xf32>
    %cst_13 = arith.constant 9.99999974E-6 : f32
    %21 = vector.broadcast %cst_13 : f32 to vector<16x1xf32>
    %22 = arith.addf %18, %21 : vector<16x1xf32>
    %23 = math.rsqrt %22 : vector<16x1xf32>
    %24 = vector.broadcast %23 : vector<16x1xf32> to vector<16x128xf32>
    %25 = arith.mulf %20, %24 : vector<16x128xf32>
    %26 = vector.broadcast %6 : vector<1x128xf32> to vector<16x128xf32>
    %27 = arith.mulf %25, %26 : vector<16x128xf32>
    %28 = vector.broadcast %7 : vector<1x128xf32> to vector<16x128xf32>
    %29 = arith.addf %27, %28 : vector<16x128xf32>
    %cst_14 = arith.constant 0.000000e+00 : f32
    %30 = vector.broadcast %cst_14 : f32 to vector<16x128xf32>
    %31 = arith.maximumf %29, %30 : vector<16x128xf32>
    %c0_15 = arith.constant 0 : index
    %c0_16 = arith.constant 0 : index
    %32 = vector.load %arg6[%c0_15, %c0_16] : memref<128x128xf32, #tpu.memory_space<vmem>>, vector<128x128xf32>
    %cst_17 = arith.constant dense<0.000000e+00> : vector<16x128xf32>
    %33 = tpu.matmul %31, %32, %cst_17 {dimension_numbers = #tpu.dot_dimension_numbers<[1], [0], [0], [1], [0, 0, 1, 1], [], []>} : vector<16x128xf32>, vector<128x128xf32>, vector<16x128xf32> -> vector<16x128xf32>
    %c0_18 = arith.constant 0 : index
    %c0_19 = arith.constant 0 : index
    %34 = vector.load %arg7[%c0_18, %c0_19] : memref<1x128xf32, #tpu.memory_space<vmem>>, vector<1x128xf32>
    %35 = vector.broadcast %34 : vector<1x128xf32> to vector<16x128xf32>
    %36 = arith.addf %33, %35 : vector<16x128xf32>
    %c0_20 = arith.constant 0 : index
    %c0_21 = arith.constant 0 : index
    %37 = vector.load %arg8[%c0_20, %c0_21] : memref<1x128xf32, #tpu.memory_space<vmem>>, vector<1x128xf32>
    %c0_22 = arith.constant 0 : index
    %c0_23 = arith.constant 0 : index
    %38 = vector.load %arg9[%c0_22, %c0_23] : memref<1x128xf32, #tpu.memory_space<vmem>>, vector<1x128xf32>
    %cst_24 = arith.constant dense<0.000000e+00> : vector<16xf32>
    %39 = vector.multi_reduction <add>, %36, %cst_24 [1] : vector<16x128xf32> to vector<16xf32>
    %40 = vector.shape_cast %39 : vector<16xf32> to vector<16x1xf32>
    %cst_25 = arith.constant 1.280000e+02 : f32
    %41 = vector.broadcast %cst_25 : f32 to vector<16x1xf32>
    %42 = arith.divf %40, %41 : vector<16x1xf32>
    %43 = vector.broadcast %42 : vector<16x1xf32> to vector<16x128xf32>
    %44 = arith.subf %36, %43 : vector<16x128xf32>
    %45 = arith.mulf %44, %44 : vector<16x128xf32>
    %cst_26 = arith.constant dense<0.000000e+00> : vector<16xf32>
    %46 = vector.multi_reduction <add>, %45, %cst_26 [1] : vector<16x128xf32> to vector<16xf32>
    %47 = vector.shape_cast %46 : vector<16xf32> to vector<16x1xf32>
    %cst_27 = arith.constant 1.280000e+02 : f32
    %48 = vector.broadcast %cst_27 : f32 to vector<16x1xf32>
    %49 = arith.divf %47, %48 : vector<16x1xf32>
    %50 = vector.broadcast %42 : vector<16x1xf32> to vector<16x128xf32>
    %51 = arith.subf %36, %50 : vector<16x128xf32>
    %cst_28 = arith.constant 9.99999974E-6 : f32
    %52 = vector.broadcast %cst_28 : f32 to vector<16x1xf32>
    %53 = arith.addf %49, %52 : vector<16x1xf32>
    %54 = math.rsqrt %53 : vector<16x1xf32>
    %55 = vector.broadcast %54 : vector<16x1xf32> to vector<16x128xf32>
    %56 = arith.mulf %51, %55 : vector<16x128xf32>
    %57 = vector.broadcast %37 : vector<1x128xf32> to vector<16x128xf32>
    %58 = arith.mulf %56, %57 : vector<16x128xf32>
    %59 = vector.broadcast %38 : vector<1x128xf32> to vector<16x128xf32>
    %60 = arith.addf %58, %59 : vector<16x128xf32>
    %cst_29 = arith.constant 0.000000e+00 : f32
    %61 = vector.broadcast %cst_29 : f32 to vector<16x128xf32>
    %62 = arith.maximumf %60, %61 : vector<16x128xf32>
    %c0_30 = arith.constant 0 : index
    %c0_31 = arith.constant 0 : index
    %63 = vector.load %arg10[%c0_30, %c0_31] : memref<128x256xf32, #tpu.memory_space<vmem>>, vector<128x256xf32>
    %cst_32 = arith.constant dense<0.000000e+00> : vector<16x256xf32>
    %64 = tpu.matmul %62, %63, %cst_32 {dimension_numbers = #tpu.dot_dimension_numbers<[1], [0], [0], [1], [0, 0, 1, 1], [], []>} : vector<16x128xf32>, vector<128x256xf32>, vector<16x256xf32> -> vector<16x256xf32>
    %c0_33 = arith.constant 0 : index
    %c0_34 = arith.constant 0 : index
    %65 = vector.load %arg11[%c0_33, %c0_34] : memref<1x256xf32, #tpu.memory_space<vmem>>, vector<1x256xf32>
    %66 = vector.broadcast %65 : vector<1x256xf32> to vector<16x256xf32>
    %67 = arith.addf %64, %66 : vector<16x256xf32>
    %c0_35 = arith.constant 0 : index
    %c0_36 = arith.constant 0 : index
    %68 = vector.load %arg12[%c0_35, %c0_36] : memref<128x128xf32, #tpu.memory_space<vmem>>, vector<128x128xf32>
    %cst_37 = arith.constant dense<0.000000e+00> : vector<16x128xf32>
    %69 = tpu.matmul %0, %68, %cst_37 {dimension_numbers = #tpu.dot_dimension_numbers<[1], [0], [0], [1], [0, 0, 1, 1], [], []>} : vector<16x128xf32>, vector<128x128xf32>, vector<16x128xf32> -> vector<16x128xf32>
    %c0_38 = arith.constant 0 : index
    %c0_39 = arith.constant 0 : index
    %70 = vector.load %arg13[%c0_38, %c0_39] : memref<1x128xf32, #tpu.memory_space<vmem>>, vector<1x128xf32>
    %71 = vector.broadcast %70 : vector<1x128xf32> to vector<16x128xf32>
    %72 = arith.addf %69, %71 : vector<16x128xf32>
    %c0_40 = arith.constant 0 : index
    %c0_41 = arith.constant 0 : index
    %73 = vector.load %arg14[%c0_40, %c0_41] : memref<1x128xf32, #tpu.memory_space<vmem>>, vector<1x128xf32>
    %c0_42 = arith.constant 0 : index
    %c0_43 = arith.constant 0 : index
    %74 = vector.load %arg15[%c0_42, %c0_43] : memref<1x128xf32, #tpu.memory_space<vmem>>, vector<1x128xf32>
    %cst_44 = arith.constant dense<0.000000e+00> : vector<16xf32>
    %75 = vector.multi_reduction <add>, %72, %cst_44 [1] : vector<16x128xf32> to vector<16xf32>
    %76 = vector.shape_cast %75 : vector<16xf32> to vector<16x1xf32>
    %cst_45 = arith.constant 1.280000e+02 : f32
    %77 = vector.broadcast %cst_45 : f32 to vector<16x1xf32>
    %78 = arith.divf %76, %77 : vector<16x1xf32>
    %79 = vector.broadcast %78 : vector<16x1xf32> to vector<16x128xf32>
    %80 = arith.subf %72, %79 : vector<16x128xf32>
    %81 = arith.mulf %80, %80 : vector<16x128xf32>
    %cst_46 = arith.constant dense<0.000000e+00> : vector<16xf32>
    %82 = vector.multi_reduction <add>, %81, %cst_46 [1] : vector<16x128xf32> to vector<16xf32>
    %83 = vector.shape_cast %82 : vector<16xf32> to vector<16x1xf32>
    %cst_47 = arith.constant 1.280000e+02 : f32
    %84 = vector.broadcast %cst_47 : f32 to vector<16x1xf32>
    %85 = arith.divf %83, %84 : vector<16x1xf32>
    %86 = vector.broadcast %78 : vector<16x1xf32> to vector<16x128xf32>
    %87 = arith.subf %72, %86 : vector<16x128xf32>
    %cst_48 = arith.constant 9.99999974E-6 : f32
    %88 = vector.broadcast %cst_48 : f32 to vector<16x1xf32>
    %89 = arith.addf %85, %88 : vector<16x1xf32>
    %90 = math.rsqrt %89 : vector<16x1xf32>
    %91 = vector.broadcast %90 : vector<16x1xf32> to vector<16x128xf32>
    %92 = arith.mulf %87, %91 : vector<16x128xf32>
    %93 = vector.broadcast %73 : vector<1x128xf32> to vector<16x128xf32>
    %94 = arith.mulf %92, %93 : vector<16x128xf32>
    %95 = vector.broadcast %74 : vector<1x128xf32> to vector<16x128xf32>
    %96 = arith.addf %94, %95 : vector<16x128xf32>
    %cst_49 = arith.constant 0.000000e+00 : f32
    %97 = vector.broadcast %cst_49 : f32 to vector<16x128xf32>
    %98 = arith.maximumf %96, %97 : vector<16x128xf32>
    %c0_50 = arith.constant 0 : index
    %c0_51 = arith.constant 0 : index
    %99 = vector.load %arg16[%c0_50, %c0_51] : memref<128x128xf32, #tpu.memory_space<vmem>>, vector<128x128xf32>
    %cst_52 = arith.constant dense<0.000000e+00> : vector<16x128xf32>
    %100 = tpu.matmul %98, %99, %cst_52 {dimension_numbers = #tpu.dot_dimension_numbers<[1], [0], [0], [1], [0, 0, 1, 1], [], []>} : vector<16x128xf32>, vector<128x128xf32>, vector<16x128xf32> -> vector<16x128xf32>
    %c0_53 = arith.constant 0 : index
    %c0_54 = arith.constant 0 : index
    %101 = vector.load %arg17[%c0_53, %c0_54] : memref<1x128xf32, #tpu.memory_space<vmem>>, vector<1x128xf32>
    %102 = vector.broadcast %101 : vector<1x128xf32> to vector<16x128xf32>
    %103 = arith.addf %100, %102 : vector<16x128xf32>
    %c0_55 = arith.constant 0 : index
    %c0_56 = arith.constant 0 : index
    %104 = vector.load %arg18[%c0_55, %c0_56] : memref<1x128xf32, #tpu.memory_space<vmem>>, vector<1x128xf32>
    %c0_57 = arith.constant 0 : index
    %c0_58 = arith.constant 0 : index
    %105 = vector.load %arg19[%c0_57, %c0_58] : memref<1x128xf32, #tpu.memory_space<vmem>>, vector<1x128xf32>
    %cst_59 = arith.constant dense<0.000000e+00> : vector<16xf32>
    %106 = vector.multi_reduction <add>, %103, %cst_59 [1] : vector<16x128xf32> to vector<16xf32>
    %107 = vector.shape_cast %106 : vector<16xf32> to vector<16x1xf32>
    %cst_60 = arith.constant 1.280000e+02 : f32
    %108 = vector.broadcast %cst_60 : f32 to vector<16x1xf32>
    %109 = arith.divf %107, %108 : vector<16x1xf32>
    %110 = vector.broadcast %109 : vector<16x1xf32> to vector<16x128xf32>
    %111 = arith.subf %103, %110 : vector<16x128xf32>
    %112 = arith.mulf %111, %111 : vector<16x128xf32>
    %cst_61 = arith.constant dense<0.000000e+00> : vector<16xf32>
    %113 = vector.multi_reduction <add>, %112, %cst_61 [1] : vector<16x128xf32> to vector<16xf32>
    %114 = vector.shape_cast %113 : vector<16xf32> to vector<16x1xf32>
    %cst_62 = arith.constant 1.280000e+02 : f32
    %115 = vector.broadcast %cst_62 : f32 to vector<16x1xf32>
    %116 = arith.divf %114, %115 : vector<16x1xf32>
    %117 = vector.broadcast %109 : vector<16x1xf32> to vector<16x128xf32>
    %118 = arith.subf %103, %117 : vector<16x128xf32>
    %cst_63 = arith.constant 9.99999974E-6 : f32
    %119 = vector.broadcast %cst_63 : f32 to vector<16x1xf32>
    %120 = arith.addf %116, %119 : vector<16x1xf32>
    %121 = math.rsqrt %120 : vector<16x1xf32>
    %122 = vector.broadcast %121 : vector<16x1xf32> to vector<16x128xf32>
    %123 = arith.mulf %118, %122 : vector<16x128xf32>
    %124 = vector.broadcast %104 : vector<1x128xf32> to vector<16x128xf32>
    %125 = arith.mulf %123, %124 : vector<16x128xf32>
    %126 = vector.broadcast %105 : vector<1x128xf32> to vector<16x128xf32>
    %127 = arith.addf %125, %126 : vector<16x128xf32>
    %cst_64 = arith.constant 0.000000e+00 : f32
    %128 = vector.broadcast %cst_64 : f32 to vector<16x128xf32>
    %129 = arith.maximumf %127, %128 : vector<16x128xf32>
    %c0_65 = arith.constant 0 : index
    %c0_66 = arith.constant 0 : index
    %130 = vector.load %arg20[%c0_65, %c0_66] : memref<128x256xf32, #tpu.memory_space<vmem>>, vector<128x256xf32>
    %cst_67 = arith.constant dense<0.000000e+00> : vector<16x256xf32>
    %131 = tpu.matmul %129, %130, %cst_67 {dimension_numbers = #tpu.dot_dimension_numbers<[1], [0], [0], [1], [0, 0, 1, 1], [], []>} : vector<16x128xf32>, vector<128x256xf32>, vector<16x256xf32> -> vector<16x256xf32>
    %c0_68 = arith.constant 0 : index
    %c0_69 = arith.constant 0 : index
    %132 = vector.load %arg21[%c0_68, %c0_69] : memref<1x256xf32, #tpu.memory_space<vmem>>, vector<1x256xf32>
    %133 = vector.broadcast %132 : vector<1x256xf32> to vector<16x256xf32>
    %134 = arith.addf %131, %133 : vector<16x256xf32>
    %c0_70 = arith.constant 0 : index
    %c0_71 = arith.constant 0 : index
    %135 = vector.load %arg22[%c0_70, %c0_71] : memref<16x512xf32, #tpu.memory_space<vmem>>, vector<16x256xf32>
    tpu.vector_store %arg22[%c0_70, %c0_71], %67 {strides = array<i32>} : memref<16x512xf32, #tpu.memory_space<vmem>>, vector<16x256xf32>,
    %c0_72 = arith.constant 0 : index
    %c256 = arith.constant 256 : index
    %136 = vector.load %arg22[%c0_72, %c256] : memref<16x512xf32, #tpu.memory_space<vmem>>, vector<16x256xf32>
    tpu.vector_store %arg22[%c0_72, %c256], %134 {strides = array<i32>} : memref<16x512xf32, #tpu.memory_space<vmem>>, vector<16x256xf32>,
    return
  }
  func.func @transform_0(%arg0: i32) -> (i32, i32) {
    %c0_i32 = arith.constant 0 : i32
    %c0_i32_0 = arith.constant 0 : i32
    return %arg0, %c0_i32 : i32, i32
  }
  func.func @transform_1(%arg0: i32) -> (i32, i32) {
    %c0_i32 = arith.constant 0 : i32
    %c0_i32_0 = arith.constant 0 : i32
    %c0_i32_1 = arith.constant 0 : i32
    return %c0_i32, %c0_i32_0 : i32, i32
  }
  func.func @transform_2(%arg0: i32) -> (i32, i32) {
    %c0_i32 = arith.constant 0 : i32
    %c0_i32_0 = arith.constant 0 : i32
    %c0_i32_1 = arith.constant 0 : i32
    return %c0_i32, %c0_i32_0 : i32, i32
  }
  func.func @transform_3(%arg0: i32) -> (i32, i32) {
    %c0_i32 = arith.constant 0 : i32
    %c0_i32_0 = arith.constant 0 : i32
    %c0_i32_1 = arith.constant 0 : i32
    return %c0_i32, %c0_i32_0 : i32, i32
  }
  func.func @transform_4(%arg0: i32) -> (i32, i32) {
    %c0_i32 = arith.constant 0 : i32
    %c0_i32_0 = arith.constant 0 : i32
    %c0_i32_1 = arith.constant 0 : i32
    return %c0_i32, %c0_i32_0 : i32, i32
  }
  func.func @transform_5(%arg0: i32) -> (i32, i32) {
    %c0_i32 = arith.constant 0 : i32
    %c0_i32_0 = arith.constant 0 : i32
    %c0_i32_1 = arith.constant 0 : i32
    return %c0_i32, %c0_i32_0 : i32, i32
  }
  func.func @transform_6(%arg0: i32) -> (i32, i32) {
    %c0_i32 = arith.constant 0 : i32
    %c0_i32_0 = arith.constant 0 : i32
    %c0_i32_1 = arith.constant 0 : i32
    return %c0_i32, %c0_i32_0 : i32, i32
  }
  func.func @transform_7(%arg0: i32) -> (i32, i32) {
    %c0_i32 = arith.constant 0 : i32
    %c0_i32_0 = arith.constant 0 : i32
    %c0_i32_1 = arith.constant 0 : i32
    return %c0_i32, %c0_i32_0 : i32, i32
  }
  func.func @transform_8(%arg0: i32) -> (i32, i32) {
    %c0_i32 = arith.constant 0 : i32
    %c0_i32_0 = arith.constant 0 : i32
    %c0_i32_1 = arith.constant 0 : i32
    return %c0_i32, %c0_i32_0 : i32, i32
  }
  func.func @transform_9(%arg0: i32) -> (i32, i32) {
    %c0_i32 = arith.constant 0 : i32
    %c0_i32_0 = arith.constant 0 : i32
    %c0_i32_1 = arith.constant 0 : i32
    return %c0_i32, %c0_i32_0 : i32, i32
  }
  func.func @transform_10(%arg0: i32) -> (i32, i32) {
    %c0_i32 = arith.constant 0 : i32
    %c0_i32_0 = arith.constant 0 : i32
    %c0_i32_1 = arith.constant 0 : i32
    return %c0_i32, %c0_i32_0 : i32, i32
  }
  func.func @transform_11(%arg0: i32) -> (i32, i32) {
    %c0_i32 = arith.constant 0 : i32
    %c0_i32_0 = arith.constant 0 : i32
    %c0_i32_1 = arith.constant 0 : i32
    return %c0_i32, %c0_i32_0 : i32, i32
  }
  func.func @transform_12(%arg0: i32) -> (i32, i32) {
    %c0_i32 = arith.constant 0 : i32
    %c0_i32_0 = arith.constant 0 : i32
    %c0_i32_1 = arith.constant 0 : i32
    return %c0_i32, %c0_i32_0 : i32, i32
  }
  func.func @transform_13(%arg0: i32) -> (i32, i32) {
    %c0_i32 = arith.constant 0 : i32
    %c0_i32_0 = arith.constant 0 : i32
    %c0_i32_1 = arith.constant 0 : i32
    return %c0_i32, %c0_i32_0 : i32, i32
  }
  func.func @transform_14(%arg0: i32) -> (i32, i32) {
    %c0_i32 = arith.constant 0 : i32
    %c0_i32_0 = arith.constant 0 : i32
    %c0_i32_1 = arith.constant 0 : i32
    return %c0_i32, %c0_i32_0 : i32, i32
  }
  func.func @transform_15(%arg0: i32) -> (i32, i32) {
    %c0_i32 = arith.constant 0 : i32
    %c0_i32_0 = arith.constant 0 : i32
    %c0_i32_1 = arith.constant 0 : i32
    return %c0_i32, %c0_i32_0 : i32, i32
  }
  func.func @transform_16(%arg0: i32) -> (i32, i32) {
    %c0_i32 = arith.constant 0 : i32
    %c0_i32_0 = arith.constant 0 : i32
    %c0_i32_1 = arith.constant 0 : i32
    return %c0_i32, %c0_i32_0 : i32, i32
  }
  func.func @transform_17(%arg0: i32) -> (i32, i32) {
    %c0_i32 = arith.constant 0 : i32
    %c0_i32_0 = arith.constant 0 : i32
    %c0_i32_1 = arith.constant 0 : i32
    return %c0_i32, %c0_i32_0 : i32, i32
  }
  func.func @transform_18(%arg0: i32) -> (i32, i32) {
    %c0_i32 = arith.constant 0 : i32
    %c0_i32_0 = arith.constant 0 : i32
    %c0_i32_1 = arith.constant 0 : i32
    return %c0_i32, %c0_i32_0 : i32, i32
  }
  func.func @transform_19(%arg0: i32) -> (i32, i32) {
    %c0_i32 = arith.constant 0 : i32
    %c0_i32_0 = arith.constant 0 : i32
    %c0_i32_1 = arith.constant 0 : i32
    return %c0_i32, %c0_i32_0 : i32, i32
  }
  func.func @transform_20(%arg0: i32) -> (i32, i32) {
    %c0_i32 = arith.constant 0 : i32
    %c0_i32_0 = arith.constant 0 : i32
    %c0_i32_1 = arith.constant 0 : i32
    return %c0_i32, %c0_i32_0 : i32, i32
  }
  func.func @transform_21(%arg0: i32) -> (i32, i32) {
    %c0_i32 = arith.constant 0 : i32
    %c0_i32_0 = arith.constant 0 : i32
    return %arg0, %c0_i32 : i32, i32
  }
}

module attributes {stable_mosaic.version = 11 : i64} {
  func.func @dual_mlp_kernel(%arg0: i32, %arg1: memref<16x384xf32, #tpu.memory_space<vmem>>, %arg2: memref<384x128xf32, #tpu.memory_space<vmem>>, %arg3: memref<1x128xf32, #tpu.memory_space<vmem>>, %arg4: memref<1x128xf32, #tpu.memory_space<vmem>>, %arg5: memref<1x128xf32, #tpu.memory_space<vmem>>, %arg6: memref<128x128xf32, #tpu.memory_space<vmem>>, %arg7: memref<1x128xf32, #tpu.memory_space<vmem>>, %arg8: memref<1x128xf32, #tpu.memory_space<vmem>>, %arg9: memref<1x128xf32, #tpu.memory_space<vmem>>, %arg10: memref<128x128xf32, #tpu.memory_space<vmem>>, %arg11: memref<1x128xf32, #tpu.memory_space<vmem>>, %arg12: memref<384x128xf32, #tpu.memory_space<vmem>>, %arg13: memref<1x128xf32, #tpu.memory_space<vmem>>, %arg14: memref<1x128xf32, #tpu.memory_space<vmem>>, %arg15: memref<1x128xf32, #tpu.memory_space<vmem>>, %arg16: memref<128x128xf32, #tpu.memory_space<vmem>>, %arg17: memref<1x128xf32, #tpu.memory_space<vmem>>, %arg18: memref<1x128xf32, #tpu.memory_space<vmem>>, %arg19: memref<1x128xf32, #tpu.memory_space<vmem>>, %arg20: memref<128x128xf32, #tpu.memory_space<vmem>>, %arg21: memref<1x128xf32, #tpu.memory_space<vmem>>, %arg22: memref<16x256xf32, #tpu.memory_space<vmem>>) attributes {dimension_semantics = [#tpu.dimension_semantics<parallel>], iteration_bounds = array<i64: 1>, scalar_prefetch = 0 : i64, scratch_operands = 0 : i64, tpu.core_type = #tpu.core_type<tc>, window_params = [{transform_indices = @transform_0, window_bounds = array<i64: 16, 384>}, {pipeline_mode = #tpu.pipeline_mode<synchronous>, transform_indices = @transform_1, window_bounds = array<i64: 384, 128>}, {pipeline_mode = #tpu.pipeline_mode<synchronous>, transform_indices = @transform_2, window_bounds = array<i64: 1, 128>}, {pipeline_mode = #tpu.pipeline_mode<synchronous>, transform_indices = @transform_3, window_bounds = array<i64: 1, 128>}, {pipeline_mode = #tpu.pipeline_mode<synchronous>, transform_indices = @transform_4, window_bounds = array<i64: 1, 128>}, {pipeline_mode = #tpu.pipeline_mode<synchronous>, transform_indices = @transform_5, window_bounds = array<i64: 128, 128>}, {pipeline_mode = #tpu.pipeline_mode<synchronous>, transform_indices = @transform_6, window_bounds = array<i64: 1, 128>}, {pipeline_mode = #tpu.pipeline_mode<synchronous>, transform_indices = @transform_7, window_bounds = array<i64: 1, 128>}, {pipeline_mode = #tpu.pipeline_mode<synchronous>, transform_indices = @transform_8, window_bounds = array<i64: 1, 128>}, {pipeline_mode = #tpu.pipeline_mode<synchronous>, transform_indices = @transform_9, window_bounds = array<i64: 128, 128>}, {pipeline_mode = #tpu.pipeline_mode<synchronous>, transform_indices = @transform_10, window_bounds = array<i64: 1, 128>}, {pipeline_mode = #tpu.pipeline_mode<synchronous>, transform_indices = @transform_11, window_bounds = array<i64: 384, 128>}, {pipeline_mode = #tpu.pipeline_mode<synchronous>, transform_indices = @transform_12, window_bounds = array<i64: 1, 128>}, {pipeline_mode = #tpu.pipeline_mode<synchronous>, transform_indices = @transform_13, window_bounds = array<i64: 1, 128>}, {pipeline_mode = #tpu.pipeline_mode<synchronous>, transform_indices = @transform_14, window_bounds = array<i64: 1, 128>}, {pipeline_mode = #tpu.pipeline_mode<synchronous>, transform_indices = @transform_15, window_bounds = array<i64: 128, 128>}, {pipeline_mode = #tpu.pipeline_mode<synchronous>, transform_indices = @transform_16, window_bounds = array<i64: 1, 128>}, {pipeline_mode = #tpu.pipeline_mode<synchronous>, transform_indices = @transform_17, window_bounds = array<i64: 1, 128>}, {pipeline_mode = #tpu.pipeline_mode<synchronous>, transform_indices = @transform_18, window_bounds = array<i64: 1, 128>}, {pipeline_mode = #tpu.pipeline_mode<synchronous>, transform_indices = @transform_19, window_bounds = array<i64: 128, 128>}, {pipeline_mode = #tpu.pipeline_mode<synchronous>, transform_indices = @transform_20, window_bounds = array<i64: 1, 128>}, {transform_indices = @transform_21, window_bounds = array<i64: 16, 256>}]} {
    %c0 = arith.constant 0 : index
    %c0_0 = arith.constant 0 : index
    %0 = vector.load %arg1[%c0, %c0_0] : memref<16x384xf32, #tpu.memory_space<vmem>>, vector<16x384xf32>
    %c0_1 = arith.constant 0 : index
    %c0_2 = arith.constant 0 : index
    %1 = vector.load %arg2[%c0_1, %c0_2] : memref<384x128xf32, #tpu.memory_space<vmem>>, vector<384x128xf32>
    %cst = arith.constant dense<0.000000e+00> : vector<16x128xf32>
    %2 = tpu.matmul %0, %1, %cst {dimension_numbers = #tpu.dot_dimension_numbers<[1], [0], [0], [1], [0, 0, 1, 1], [], []>} : vector<16x384xf32>, vector<384x128xf32>, vector<16x128xf32> -> vector<16x128xf32>
    %c0_3 = arith.constant 0 : index
    %c0_4 = arith.constant 0 : index
    %3 = vector.load %arg3[%c0_3, %c0_4] : memref<1x128xf32, #tpu.memory_space<vmem>>, vector<1x128xf32>
    %4 = vector.broadcast %3 : vector<1x128xf32> to vector<16x128xf32>
    %5 = arith.addf %2, %4 : vector<16x128xf32>
    %c0_5 = arith.constant 0 : index
    %c0_6 = arith.constant 0 : index
    %6 = vector.load %arg4[%c0_5, %c0_6] : memref<1x128xf32, #tpu.memory_space<vmem>>, vector<1x128xf32>
    %c0_7 = arith.constant 0 : index
    %c0_8 = arith.constant 0 : index
    %7 = vector.load %arg5[%c0_7, %c0_8] : memref<1x128xf32, #tpu.memory_space<vmem>>, vector<1x128xf32>
    %cst_9 = arith.constant dense<0.000000e+00> : vector<16xf32>
    %8 = vector.multi_reduction <add>, %5, %cst_9 [1] : vector<16x128xf32> to vector<16xf32>
    %9 = vector.shape_cast %8 : vector<16xf32> to vector<16x1xf32>
    %cst_10 = arith.constant 1.280000e+02 : f32
    %10 = vector.broadcast %cst_10 : f32 to vector<16x1xf32>
    %11 = arith.divf %9, %10 : vector<16x1xf32>
    %12 = vector.broadcast %11 : vector<16x1xf32> to vector<16x128xf32>
    %13 = arith.subf %5, %12 : vector<16x128xf32>
    %14 = arith.mulf %13, %13 : vector<16x128xf32>
    %cst_11 = arith.constant dense<0.000000e+00> : vector<16xf32>
    %15 = vector.multi_reduction <add>, %14, %cst_11 [1] : vector<16x128xf32> to vector<16xf32>
    %16 = vector.shape_cast %15 : vector<16xf32> to vector<16x1xf32>
    %cst_12 = arith.constant 1.280000e+02 : f32
    %17 = vector.broadcast %cst_12 : f32 to vector<16x1xf32>
    %18 = arith.divf %16, %17 : vector<16x1xf32>
    %19 = vector.broadcast %11 : vector<16x1xf32> to vector<16x128xf32>
    %20 = arith.subf %5, %19 : vector<16x128xf32>
    %cst_13 = arith.constant 9.99999974E-6 : f32
    %21 = vector.broadcast %cst_13 : f32 to vector<16x1xf32>
    %22 = arith.addf %18, %21 : vector<16x1xf32>
    %23 = math.rsqrt %22 : vector<16x1xf32>
    %24 = vector.broadcast %23 : vector<16x1xf32> to vector<16x128xf32>
    %25 = arith.mulf %20, %24 : vector<16x128xf32>
    %26 = vector.broadcast %6 : vector<1x128xf32> to vector<16x128xf32>
    %27 = arith.mulf %25, %26 : vector<16x128xf32>
    %28 = vector.broadcast %7 : vector<1x128xf32> to vector<16x128xf32>
    %29 = arith.addf %27, %28 : vector<16x128xf32>
    %cst_14 = arith.constant 0.000000e+00 : f32
    %30 = vector.broadcast %cst_14 : f32 to vector<16x128xf32>
    %31 = arith.maximumf %29, %30 : vector<16x128xf32>
    %c0_15 = arith.constant 0 : index
    %c0_16 = arith.constant 0 : index
    %32 = vector.load %arg6[%c0_15, %c0_16] : memref<128x128xf32, #tpu.memory_space<vmem>>, vector<128x128xf32>
    %cst_17 = arith.constant dense<0.000000e+00> : vector<16x128xf32>
    %33 = tpu.matmul %31, %32, %cst_17 {dimension_numbers = #tpu.dot_dimension_numbers<[1], [0], [0], [1], [0, 0, 1, 1], [], []>} : vector<16x128xf32>, vector<128x128xf32>, vector<16x128xf32> -> vector<16x128xf32>
    %c0_18 = arith.constant 0 : index
    %c0_19 = arith.constant 0 : index
    %34 = vector.load %arg7[%c0_18, %c0_19] : memref<1x128xf32, #tpu.memory_space<vmem>>, vector<1x128xf32>
    %35 = vector.broadcast %34 : vector<1x128xf32> to vector<16x128xf32>
    %36 = arith.addf %33, %35 : vector<16x128xf32>
    %c0_20 = arith.constant 0 : index
    %c0_21 = arith.constant 0 : index
    %37 = vector.load %arg8[%c0_20, %c0_21] : memref<1x128xf32, #tpu.memory_space<vmem>>, vector<1x128xf32>
    %c0_22 = arith.constant 0 : index
    %c0_23 = arith.constant 0 : index
    %38 = vector.load %arg9[%c0_22, %c0_23] : memref<1x128xf32, #tpu.memory_space<vmem>>, vector<1x128xf32>
    %cst_24 = arith.constant dense<0.000000e+00> : vector<16xf32>
    %39 = vector.multi_reduction <add>, %36, %cst_24 [1] : vector<16x128xf32> to vector<16xf32>
    %40 = vector.shape_cast %39 : vector<16xf32> to vector<16x1xf32>
    %cst_25 = arith.constant 1.280000e+02 : f32
    %41 = vector.broadcast %cst_25 : f32 to vector<16x1xf32>
    %42 = arith.divf %40, %41 : vector<16x1xf32>
    %43 = vector.broadcast %42 : vector<16x1xf32> to vector<16x128xf32>
    %44 = arith.subf %36, %43 : vector<16x128xf32>
    %45 = arith.mulf %44, %44 : vector<16x128xf32>
    %cst_26 = arith.constant dense<0.000000e+00> : vector<16xf32>
    %46 = vector.multi_reduction <add>, %45, %cst_26 [1] : vector<16x128xf32> to vector<16xf32>
    %47 = vector.shape_cast %46 : vector<16xf32> to vector<16x1xf32>
    %cst_27 = arith.constant 1.280000e+02 : f32
    %48 = vector.broadcast %cst_27 : f32 to vector<16x1xf32>
    %49 = arith.divf %47, %48 : vector<16x1xf32>
    %50 = vector.broadcast %42 : vector<16x1xf32> to vector<16x128xf32>
    %51 = arith.subf %36, %50 : vector<16x128xf32>
    %cst_28 = arith.constant 9.99999974E-6 : f32
    %52 = vector.broadcast %cst_28 : f32 to vector<16x1xf32>
    %53 = arith.addf %49, %52 : vector<16x1xf32>
    %54 = math.rsqrt %53 : vector<16x1xf32>
    %55 = vector.broadcast %54 : vector<16x1xf32> to vector<16x128xf32>
    %56 = arith.mulf %51, %55 : vector<16x128xf32>
    %57 = vector.broadcast %37 : vector<1x128xf32> to vector<16x128xf32>
    %58 = arith.mulf %56, %57 : vector<16x128xf32>
    %59 = vector.broadcast %38 : vector<1x128xf32> to vector<16x128xf32>
    %60 = arith.addf %58, %59 : vector<16x128xf32>
    %cst_29 = arith.constant 0.000000e+00 : f32
    %61 = vector.broadcast %cst_29 : f32 to vector<16x128xf32>
    %62 = arith.maximumf %60, %61 : vector<16x128xf32>
    %c0_30 = arith.constant 0 : index
    %c0_31 = arith.constant 0 : index
    %63 = vector.load %arg10[%c0_30, %c0_31] : memref<128x128xf32, #tpu.memory_space<vmem>>, vector<128x128xf32>
    %cst_32 = arith.constant dense<0.000000e+00> : vector<16x128xf32>
    %64 = tpu.matmul %62, %63, %cst_32 {dimension_numbers = #tpu.dot_dimension_numbers<[1], [0], [0], [1], [0, 0, 1, 1], [], []>} : vector<16x128xf32>, vector<128x128xf32>, vector<16x128xf32> -> vector<16x128xf32>
    %c0_33 = arith.constant 0 : index
    %c0_34 = arith.constant 0 : index
    %65 = vector.load %arg11[%c0_33, %c0_34] : memref<1x128xf32, #tpu.memory_space<vmem>>, vector<1x128xf32>
    %66 = vector.broadcast %65 : vector<1x128xf32> to vector<16x128xf32>
    %67 = arith.addf %64, %66 : vector<16x128xf32>
    %c0_35 = arith.constant 0 : index
    %c0_36 = arith.constant 0 : index
    %68 = vector.load %arg12[%c0_35, %c0_36] : memref<384x128xf32, #tpu.memory_space<vmem>>, vector<384x128xf32>
    %cst_37 = arith.constant dense<0.000000e+00> : vector<16x128xf32>
    %69 = tpu.matmul %0, %68, %cst_37 {dimension_numbers = #tpu.dot_dimension_numbers<[1], [0], [0], [1], [0, 0, 1, 1], [], []>} : vector<16x384xf32>, vector<384x128xf32>, vector<16x128xf32> -> vector<16x128xf32>
    %c0_38 = arith.constant 0 : index
    %c0_39 = arith.constant 0 : index
    %70 = vector.load %arg13[%c0_38, %c0_39] : memref<1x128xf32, #tpu.memory_space<vmem>>, vector<1x128xf32>
    %71 = vector.broadcast %70 : vector<1x128xf32> to vector<16x128xf32>
    %72 = arith.addf %69, %71 : vector<16x128xf32>
    %c0_40 = arith.constant 0 : index
    %c0_41 = arith.constant 0 : index
    %73 = vector.load %arg14[%c0_40, %c0_41] : memref<1x128xf32, #tpu.memory_space<vmem>>, vector<1x128xf32>
    %c0_42 = arith.constant 0 : index
    %c0_43 = arith.constant 0 : index
    %74 = vector.load %arg15[%c0_42, %c0_43] : memref<1x128xf32, #tpu.memory_space<vmem>>, vector<1x128xf32>
    %cst_44 = arith.constant dense<0.000000e+00> : vector<16xf32>
    %75 = vector.multi_reduction <add>, %72, %cst_44 [1] : vector<16x128xf32> to vector<16xf32>
    %76 = vector.shape_cast %75 : vector<16xf32> to vector<16x1xf32>
    %cst_45 = arith.constant 1.280000e+02 : f32
    %77 = vector.broadcast %cst_45 : f32 to vector<16x1xf32>
    %78 = arith.divf %76, %77 : vector<16x1xf32>
    %79 = vector.broadcast %78 : vector<16x1xf32> to vector<16x128xf32>
    %80 = arith.subf %72, %79 : vector<16x128xf32>
    %81 = arith.mulf %80, %80 : vector<16x128xf32>
    %cst_46 = arith.constant dense<0.000000e+00> : vector<16xf32>
    %82 = vector.multi_reduction <add>, %81, %cst_46 [1] : vector<16x128xf32> to vector<16xf32>
    %83 = vector.shape_cast %82 : vector<16xf32> to vector<16x1xf32>
    %cst_47 = arith.constant 1.280000e+02 : f32
    %84 = vector.broadcast %cst_47 : f32 to vector<16x1xf32>
    %85 = arith.divf %83, %84 : vector<16x1xf32>
    %86 = vector.broadcast %78 : vector<16x1xf32> to vector<16x128xf32>
    %87 = arith.subf %72, %86 : vector<16x128xf32>
    %cst_48 = arith.constant 9.99999974E-6 : f32
    %88 = vector.broadcast %cst_48 : f32 to vector<16x1xf32>
    %89 = arith.addf %85, %88 : vector<16x1xf32>
    %90 = math.rsqrt %89 : vector<16x1xf32>
    %91 = vector.broadcast %90 : vector<16x1xf32> to vector<16x128xf32>
    %92 = arith.mulf %87, %91 : vector<16x128xf32>
    %93 = vector.broadcast %73 : vector<1x128xf32> to vector<16x128xf32>
    %94 = arith.mulf %92, %93 : vector<16x128xf32>
    %95 = vector.broadcast %74 : vector<1x128xf32> to vector<16x128xf32>
    %96 = arith.addf %94, %95 : vector<16x128xf32>
    %cst_49 = arith.constant 0.000000e+00 : f32
    %97 = vector.broadcast %cst_49 : f32 to vector<16x128xf32>
    %98 = arith.maximumf %96, %97 : vector<16x128xf32>
    %c0_50 = arith.constant 0 : index
    %c0_51 = arith.constant 0 : index
    %99 = vector.load %arg16[%c0_50, %c0_51] : memref<128x128xf32, #tpu.memory_space<vmem>>, vector<128x128xf32>
    %cst_52 = arith.constant dense<0.000000e+00> : vector<16x128xf32>
    %100 = tpu.matmul %98, %99, %cst_52 {dimension_numbers = #tpu.dot_dimension_numbers<[1], [0], [0], [1], [0, 0, 1, 1], [], []>} : vector<16x128xf32>, vector<128x128xf32>, vector<16x128xf32> -> vector<16x128xf32>
    %c0_53 = arith.constant 0 : index
    %c0_54 = arith.constant 0 : index
    %101 = vector.load %arg17[%c0_53, %c0_54] : memref<1x128xf32, #tpu.memory_space<vmem>>, vector<1x128xf32>
    %102 = vector.broadcast %101 : vector<1x128xf32> to vector<16x128xf32>
    %103 = arith.addf %100, %102 : vector<16x128xf32>
    %c0_55 = arith.constant 0 : index
    %c0_56 = arith.constant 0 : index
    %104 = vector.load %arg18[%c0_55, %c0_56] : memref<1x128xf32, #tpu.memory_space<vmem>>, vector<1x128xf32>
    %c0_57 = arith.constant 0 : index
    %c0_58 = arith.constant 0 : index
    %105 = vector.load %arg19[%c0_57, %c0_58] : memref<1x128xf32, #tpu.memory_space<vmem>>, vector<1x128xf32>
    %cst_59 = arith.constant dense<0.000000e+00> : vector<16xf32>
    %106 = vector.multi_reduction <add>, %103, %cst_59 [1] : vector<16x128xf32> to vector<16xf32>
    %107 = vector.shape_cast %106 : vector<16xf32> to vector<16x1xf32>
    %cst_60 = arith.constant 1.280000e+02 : f32
    %108 = vector.broadcast %cst_60 : f32 to vector<16x1xf32>
    %109 = arith.divf %107, %108 : vector<16x1xf32>
    %110 = vector.broadcast %109 : vector<16x1xf32> to vector<16x128xf32>
    %111 = arith.subf %103, %110 : vector<16x128xf32>
    %112 = arith.mulf %111, %111 : vector<16x128xf32>
    %cst_61 = arith.constant dense<0.000000e+00> : vector<16xf32>
    %113 = vector.multi_reduction <add>, %112, %cst_61 [1] : vector<16x128xf32> to vector<16xf32>
    %114 = vector.shape_cast %113 : vector<16xf32> to vector<16x1xf32>
    %cst_62 = arith.constant 1.280000e+02 : f32
    %115 = vector.broadcast %cst_62 : f32 to vector<16x1xf32>
    %116 = arith.divf %114, %115 : vector<16x1xf32>
    %117 = vector.broadcast %109 : vector<16x1xf32> to vector<16x128xf32>
    %118 = arith.subf %103, %117 : vector<16x128xf32>
    %cst_63 = arith.constant 9.99999974E-6 : f32
    %119 = vector.broadcast %cst_63 : f32 to vector<16x1xf32>
    %120 = arith.addf %116, %119 : vector<16x1xf32>
    %121 = math.rsqrt %120 : vector<16x1xf32>
    %122 = vector.broadcast %121 : vector<16x1xf32> to vector<16x128xf32>
    %123 = arith.mulf %118, %122 : vector<16x128xf32>
    %124 = vector.broadcast %104 : vector<1x128xf32> to vector<16x128xf32>
    %125 = arith.mulf %123, %124 : vector<16x128xf32>
    %126 = vector.broadcast %105 : vector<1x128xf32> to vector<16x128xf32>
    %127 = arith.addf %125, %126 : vector<16x128xf32>
    %cst_64 = arith.constant 0.000000e+00 : f32
    %128 = vector.broadcast %cst_64 : f32 to vector<16x128xf32>
    %129 = arith.maximumf %127, %128 : vector<16x128xf32>
    %c0_65 = arith.constant 0 : index
    %c0_66 = arith.constant 0 : index
    %130 = vector.load %arg20[%c0_65, %c0_66] : memref<128x128xf32, #tpu.memory_space<vmem>>, vector<128x128xf32>
    %cst_67 = arith.constant dense<0.000000e+00> : vector<16x128xf32>
    %131 = tpu.matmul %129, %130, %cst_67 {dimension_numbers = #tpu.dot_dimension_numbers<[1], [0], [0], [1], [0, 0, 1, 1], [], []>} : vector<16x128xf32>, vector<128x128xf32>, vector<16x128xf32> -> vector<16x128xf32>
    %c0_68 = arith.constant 0 : index
    %c0_69 = arith.constant 0 : index
    %132 = vector.load %arg21[%c0_68, %c0_69] : memref<1x128xf32, #tpu.memory_space<vmem>>, vector<1x128xf32>
    %133 = vector.broadcast %132 : vector<1x128xf32> to vector<16x128xf32>
    %134 = arith.addf %131, %133 : vector<16x128xf32>
    %c0_70 = arith.constant 0 : index
    %c0_71 = arith.constant 0 : index
    %135 = vector.load %arg22[%c0_70, %c0_71] : memref<16x256xf32, #tpu.memory_space<vmem>>, vector<16x128xf32>
    tpu.vector_store %arg22[%c0_70, %c0_71], %67 {strides = array<i32>} : memref<16x256xf32, #tpu.memory_space<vmem>>, vector<16x128xf32>,
    %c0_72 = arith.constant 0 : index
    %c128 = arith.constant 128 : index
    %136 = vector.load %arg22[%c0_72, %c128] : memref<16x256xf32, #tpu.memory_space<vmem>>, vector<16x128xf32>
    tpu.vector_store %arg22[%c0_72, %c128], %134 {strides = array<i32>} : memref<16x256xf32, #tpu.memory_space<vmem>>, vector<16x128xf32>,
    return
  }
  func.func @transform_0(%arg0: i32) -> (i32, i32) {
    %c0_i32 = arith.constant 0 : i32
    %c0_i32_0 = arith.constant 0 : i32
    return %arg0, %c0_i32 : i32, i32
  }
  func.func @transform_1(%arg0: i32) -> (i32, i32) {
    %c0_i32 = arith.constant 0 : i32
    %c0_i32_0 = arith.constant 0 : i32
    %c0_i32_1 = arith.constant 0 : i32
    return %c0_i32, %c0_i32_0 : i32, i32
  }
  func.func @transform_2(%arg0: i32) -> (i32, i32) {
    %c0_i32 = arith.constant 0 : i32
    %c0_i32_0 = arith.constant 0 : i32
    %c0_i32_1 = arith.constant 0 : i32
    return %c0_i32, %c0_i32_0 : i32, i32
  }
  func.func @transform_3(%arg0: i32) -> (i32, i32) {
    %c0_i32 = arith.constant 0 : i32
    %c0_i32_0 = arith.constant 0 : i32
    %c0_i32_1 = arith.constant 0 : i32
    return %c0_i32, %c0_i32_0 : i32, i32
  }
  func.func @transform_4(%arg0: i32) -> (i32, i32) {
    %c0_i32 = arith.constant 0 : i32
    %c0_i32_0 = arith.constant 0 : i32
    %c0_i32_1 = arith.constant 0 : i32
    return %c0_i32, %c0_i32_0 : i32, i32
  }
  func.func @transform_5(%arg0: i32) -> (i32, i32) {
    %c0_i32 = arith.constant 0 : i32
    %c0_i32_0 = arith.constant 0 : i32
    %c0_i32_1 = arith.constant 0 : i32
    return %c0_i32, %c0_i32_0 : i32, i32
  }
  func.func @transform_6(%arg0: i32) -> (i32, i32) {
    %c0_i32 = arith.constant 0 : i32
    %c0_i32_0 = arith.constant 0 : i32
    %c0_i32_1 = arith.constant 0 : i32
    return %c0_i32, %c0_i32_0 : i32, i32
  }
  func.func @transform_7(%arg0: i32) -> (i32, i32) {
    %c0_i32 = arith.constant 0 : i32
    %c0_i32_0 = arith.constant 0 : i32
    %c0_i32_1 = arith.constant 0 : i32
    return %c0_i32, %c0_i32_0 : i32, i32
  }
  func.func @transform_8(%arg0: i32) -> (i32, i32) {
    %c0_i32 = arith.constant 0 : i32
    %c0_i32_0 = arith.constant 0 : i32
    %c0_i32_1 = arith.constant 0 : i32
    return %c0_i32, %c0_i32_0 : i32, i32
  }
  func.func @transform_9(%arg0: i32) -> (i32, i32) {
    %c0_i32 = arith.constant 0 : i32
    %c0_i32_0 = arith.constant 0 : i32
    %c0_i32_1 = arith.constant 0 : i32
    return %c0_i32, %c0_i32_0 : i32, i32
  }
  func.func @transform_10(%arg0: i32) -> (i32, i32) {
    %c0_i32 = arith.constant 0 : i32
    %c0_i32_0 = arith.constant 0 : i32
    %c0_i32_1 = arith.constant 0 : i32
    return %c0_i32, %c0_i32_0 : i32, i32
  }
  func.func @transform_11(%arg0: i32) -> (i32, i32) {
    %c0_i32 = arith.constant 0 : i32
    %c0_i32_0 = arith.constant 0 : i32
    %c0_i32_1 = arith.constant 0 : i32
    return %c0_i32, %c0_i32_0 : i32, i32
  }
  func.func @transform_12(%arg0: i32) -> (i32, i32) {
    %c0_i32 = arith.constant 0 : i32
    %c0_i32_0 = arith.constant 0 : i32
    %c0_i32_1 = arith.constant 0 : i32
    return %c0_i32, %c0_i32_0 : i32, i32
  }
  func.func @transform_13(%arg0: i32) -> (i32, i32) {
    %c0_i32 = arith.constant 0 : i32
    %c0_i32_0 = arith.constant 0 : i32
    %c0_i32_1 = arith.constant 0 : i32
    return %c0_i32, %c0_i32_0 : i32, i32
  }
  func.func @transform_14(%arg0: i32) -> (i32, i32) {
    %c0_i32 = arith.constant 0 : i32
    %c0_i32_0 = arith.constant 0 : i32
    %c0_i32_1 = arith.constant 0 : i32
    return %c0_i32, %c0_i32_0 : i32, i32
  }
  func.func @transform_15(%arg0: i32) -> (i32, i32) {
    %c0_i32 = arith.constant 0 : i32
    %c0_i32_0 = arith.constant 0 : i32
    %c0_i32_1 = arith.constant 0 : i32
    return %c0_i32, %c0_i32_0 : i32, i32
  }
  func.func @transform_16(%arg0: i32) -> (i32, i32) {
    %c0_i32 = arith.constant 0 : i32
    %c0_i32_0 = arith.constant 0 : i32
    %c0_i32_1 = arith.constant 0 : i32
    return %c0_i32, %c0_i32_0 : i32, i32
  }
  func.func @transform_17(%arg0: i32) -> (i32, i32) {
    %c0_i32 = arith.constant 0 : i32
    %c0_i32_0 = arith.constant 0 : i32
    %c0_i32_1 = arith.constant 0 : i32
    return %c0_i32, %c0_i32_0 : i32, i32
  }
  func.func @transform_18(%arg0: i32) -> (i32, i32) {
    %c0_i32 = arith.constant 0 : i32
    %c0_i32_0 = arith.constant 0 : i32
    %c0_i32_1 = arith.constant 0 : i32
    return %c0_i32, %c0_i32_0 : i32, i32
  }
  func.func @transform_19(%arg0: i32) -> (i32, i32) {
    %c0_i32 = arith.constant 0 : i32
    %c0_i32_0 = arith.constant 0 : i32
    %c0_i32_1 = arith.constant 0 : i32
    return %c0_i32, %c0_i32_0 : i32, i32
  }
  func.func @transform_20(%arg0: i32) -> (i32, i32) {
    %c0_i32 = arith.constant 0 : i32
    %c0_i32_0 = arith.constant 0 : i32
    %c0_i32_1 = arith.constant 0 : i32
    return %c0_i32, %c0_i32_0 : i32, i32
  }
  func.func @transform_21(%arg0: i32) -> (i32, i32) {
    %c0_i32 = arith.constant 0 : i32
    %c0_i32_0 = arith.constant 0 : i32
    return %arg0, %c0_i32 : i32, i32
  }
}

</mosaic_0001>

<bundles_post_ra>
// kernel: dual_encoder_decoder_forward.2
= control target key start
LH: loop header
LB: loop body
LE: loop exit
PB: predicated region body
PF: predicated region fallthrough
CT: control target
= control target key end

     0   :  { %s2193_s0 = inlined_call_operand.vmem [shape: f32[16,128], index: 0, kind: input, shape index: {}]   ;;  %s2194_s1 = inlined_call_operand.vmem [shape: f32[128,128], index: 1, kind: input, shape index: {}]   ;;  %s2195_s2 = inlined_call_operand.hbm [shape: f32[1,128], index: 2, kind: input, shape index: {}]   ;;  %s2196_s3 = inlined_call_operand.hbm [shape: f32[1,128], index: 3, kind: input, shape index: {}]   ;;  %s2197_s4 = inlined_call_operand.hbm [shape: f32[1,128], index: 4, kind: input, shape index: {}]   ;;  %s2198_s5 = inlined_call_operand.vmem [shape: f32[128,128], index: 5, kind: input, shape index: {}]   ;;  %s2199_s6 = inlined_call_operand.hbm [shape: f32[1,128], index: 6, kind: input, shape index: {}]   ;;  %s2200_s7 = inlined_call_operand.hbm [shape: f32[1,128], index: 7, kind: input, shape index: {}]   ;;  %s2201_s8 = inlined_call_operand.hbm [shape: f32[1,128], index: 8, kind: input, shape index: {}]   ;;  %s2202_s9 = inlined_call_operand.vmem [shape: f32[128,256], index: 9, kind: input, shape index: {}]   ;;  %s2203_s10 = inlined_call_operand.vmem [shape: f32[1,256], index: 10, kind: input, shape index: {}]   ;;  %s2204_s11 = inlined_call_operand.vmem [shape: f32[128,128], index: 11, kind: input, shape index: {}]   ;;  %s2205_s12 = inlined_call_operand.vmem [shape: f32[1,128], index: 12, kind: input, shape index: {}]   ;;  %s2206_s13 = inlined_call_operand.vmem [shape: f32[1,128], index: 13, kind: input, shape index: {}]   ;;  %s2207_s14 = inlined_call_operand.vmem [shape: f32[1,128], index: 14, kind: input, shape index: {}]   ;;  %s2208_s15 = inlined_call_operand.hbm [shape: f32[128,128], index: 15, kind: input, shape index: {}]   ;;  %s2209_s16 = inlined_call_operand.vmem [shape: f32[1,128], index: 16, kind: input, shape index: {}]   ;;  %s2210_s17 = inlined_call_operand.vmem [shape: f32[1,128], index: 17, kind: input, shape index: {}]   ;;  %s2211_s18 = inlined_call_operand.vmem [shape: f32[1,128], index: 18, kind: input, shape index: {}]   ;;  %s2212_s19 = inlined_call_operand.hbm [shape: f32[128,256], index: 19, kind: input, shape index: {}]   ;;  %s2213_s20 = inlined_call_operand.vmem [shape: f32[1,256], index: 20, kind: input, shape index: {}]   ;;  %s2214_s21 = inlined_call_operand.vmem [shape: f32[16,512], index: 21, kind: output, shape index: {}]  }
   0x1   :  { %2221 = sst [smem:[#allocation20_spill]] %s2193_s0 }
   0x2   :  { %2222 = sst [smem:[#allocation21_spill]] %s2194_s1 }
   0x3   :  { %2223 = sst [smem:[#allocation22_spill]] %s2195_s2 }
   0x4   :  { %2224 = sst [smem:[#allocation23_spill]] %s2196_s3 }
   0x5   :  { %2225 = sst [smem:[#allocation24_spill]] %s2197_s4 }
   0x6   :  { %2226 = sst [smem:[#allocation25_spill]] %s2198_s5 }
   0x7   :  { %26 = vsyncpa [#allocation3], 0 }
   0x8   :  { %27 = vsyncpa [#allocation5], 0 }
   0x9   :  { %28 = vsyncpa [#allocation8], 0 }
   0xa   :  { %29 = vsyncpa [#allocation11], 0 }
   0xb   :  { %30 = vsyncpa [#allocation14], 0  ;;  %s1618_s2 = smov [#allocation4]   ;;  %s1619_s26 = smov [#allocation7]  }
   0xc   :  { %s51_s25 = sshll.u32 %s1618_s2, 4  ;;  %s73_s27 = sshll.u32 %s1619_s26, 4  ;;  %s52_s25 = int_to_ptr.vmem [resolvable:$true] %s51_s25  ;;  %s74_s27 = int_to_ptr.vmem [resolvable:$true] %s73_s27 }
   0xd   :  { %s2227_s29 = sld [smem:[#allocation23_spill]] }
  0x13   :  { %s1432_s0 = scalar_lea.hbm %s2227_s29, 16 }
  0x14   :  { %p1433_p0 = scmp.ne.s32.totalorder %s2227_s29, %s1432_s0  ;;  %p1436_p1 = scmp.lt.u32.totalorder %s1432_s0, %s2227_s29 }
  0x16   :  { %p1438_p2 = pnand %p1436_p1, %p1433_p0 }
  0x18   :  { %1441 = shalt.err (!%p1438_p2)
}
  0x19   :  { %s1442_s23 = scalar_lea.vmem %s52_s25, 16  ;;  %s1446_s1 = scalar_lea.vmem %s52_s25, 32 }
  0x1a   :  { %p1443_p3 = scmp.ne.s32.totalorder %s52_s25, %s1442_s23  ;;  %p1447_p4 = scmp.lt.s32.totalorder %s52_s25, %s52_s25 }
  0x1b   :  { %p1448_p5 = scmp.lt.s32.totalorder %s1446_s1, %s1442_s23 }
  0x1d   :  { %p1449_p6 = por %p1448_p5, %p1447_p4 }
  0x1f   :  { %p1450_p7 = pnand %p1449_p6, %p1443_p3 }
  0x21   :  { %1453 = shalt.err (!%p1450_p7)
}
  0x22   :  { %54 = dma.hbm_to_vmem [thread:$0]  %s2227_s29, 16, %s52_s25, [#allocation5]  }
  0x23   :  { %s1454_s28 = scalar_lea.hbm %s2199_s6, 16 }
  0x24   :  { %p1455_p8 = scmp.ne.s32.totalorder %s2199_s6, %s1454_s28  ;;  %p1458_p9 = scmp.lt.u32.totalorder %s1454_s28, %s2199_s6 }
  0x26   :  { %p1460_p10 = pnand %p1458_p9, %p1455_p8 }
  0x28   :  { %1463 = shalt.err (!%p1460_p10)
}
  0x29   :  { %s1464_s22 = scalar_lea.vmem %s74_s27, 16  ;;  %s1468_s23 = scalar_lea.vmem %s74_s27, 32 }
  0x2a   :  { %p1465_p11 = scmp.ne.s32.totalorder %s74_s27, %s1464_s22  ;;  %p1469_p12 = scmp.lt.s32.totalorder %s74_s27, %s74_s27 }
  0x2b   :  { %p1470_p13 = scmp.lt.s32.totalorder %s1468_s23, %s1464_s22 }
  0x2d   :  { %p1471_p0 = por %p1470_p13, %p1469_p12 }
  0x2f   :  { %p1472_p1 = pnand %p1471_p0, %p1465_p11 }
  0x31   :  { %1475 = shalt.err (!%p1472_p1)
}
  0x32   :  { %76 = dma.hbm_to_vmem [thread:$0]  %s2199_s6, 16, %s74_s27, [#allocation8]  }
  0x33   :  { %s1620_s1 = smov [#allocation10]   ;;  %s1621_s2 = smov [#allocation2]  }
  0x34   :  { %s93_s24 = sshll.u32 %s1620_s1, 4  ;;  %s41_s26 = sshll.u32 %s1621_s2, 4  ;;  %s94_s24 = int_to_ptr.vmem [resolvable:$true] %s93_s24  ;;  %s42_s26 = int_to_ptr.vmem [resolvable:$true] %s41_s26 }
  0x35   :  { %s1476_s4 = scalar_lea.hbm %s2201_s8, 16 }
  0x36   :  { %p1477_p2 = scmp.ne.s32.totalorder %s2201_s8, %s1476_s4  ;;  %p1480_p3 = scmp.lt.u32.totalorder %s1476_s4, %s2201_s8 }
  0x38   :  { %p1482_p4 = pnand %p1480_p3, %p1477_p2 }
  0x3a   :  { %1485 = shalt.err (!%p1482_p4)
}
  0x3b   :  { %s1486_s6 = scalar_lea.vmem %s94_s24, 16  ;;  %s1490_s27 = scalar_lea.vmem %s94_s24, 32 }
  0x3c   :  { %p1487_p5 = scmp.ne.s32.totalorder %s94_s24, %s1486_s6  ;;  %p1491_p6 = scmp.lt.s32.totalorder %s94_s24, %s94_s24 }
  0x3d   :  { %p1492_p7 = scmp.lt.s32.totalorder %s1490_s27, %s1486_s6 }
  0x3f   :  { %p1493_p8 = por %p1492_p7, %p1491_p6 }
  0x41   :  { %p1494_p9 = pnand %p1493_p8, %p1487_p5 }
  0x43   :  { %1497 = shalt.err (!%p1494_p9)
}
  0x44   :  { %96 = dma.hbm_to_vmem [thread:$0]  %s2201_s8, 16, %s94_s24, [#allocation11]  }
  0x45   :  { %s2228_s2 = sld [smem:[#allocation22_spill]] }
  0x4b   :  { %s1498_s3 = scalar_lea.hbm %s2228_s2, 16 }
  0x4c   :  { %p1499_p10 = scmp.ne.s32.totalorder %s2228_s2, %s1498_s3  ;;  %p1502_p11 = scmp.lt.u32.totalorder %s1498_s3, %s2228_s2 }
  0x4e   :  { %p1504_p12 = pnand %p1502_p11, %p1499_p10 }
  0x50   :  { %1507 = shalt.err (!%p1504_p12)
}
  0x51   :  { %s1508_s5 = scalar_lea.vmem %s42_s26, 16  ;;  %s1512_s22 = scalar_lea.vmem %s42_s26, 32 }
  0x52   :  { %p1509_p13 = scmp.ne.s32.totalorder %s42_s26, %s1508_s5  ;;  %p1513_p0 = scmp.lt.s32.totalorder %s42_s26, %s42_s26 }
  0x53   :  { %p1514_p1 = scmp.lt.s32.totalorder %s1512_s22, %s1508_s5 }
  0x55   :  { %p1515_p2 = por %p1514_p1, %p1513_p0 }
  0x57   :  { %p1516_p3 = pnand %p1515_p2, %p1509_p13 }
  0x59   :  { %1519 = shalt.err (!%p1516_p3)
}
  0x5a   :  { %44 = dma.hbm_to_vmem [thread:$0]  %s2228_s2, 16, %s42_s26, [#allocation3]  }
  0x5b   :  { %s1622_s6 = smov [#allocation6]   ;;  %s1623_s23 = smov [#allocation9]  }
  0x5c   :  { %s61_s27 = sshll.u32 %s1622_s6, 4  ;;  %s83_s25 = sshll.u32 %s1623_s23, 4  ;;  %s62_s27 = int_to_ptr.vmem [resolvable:$true] %s61_s27  ;;  %s84_s25 = int_to_ptr.vmem [resolvable:$true] %s83_s25 }
  0x5d   :  { %s2229_s3 = sld [smem:[#allocation24_spill]] }
  0x63   :  { %s1520_s28 = scalar_lea.hbm %s2229_s3, 16 }
  0x64   :  { %p1521_p4 = scmp.ne.s32.totalorder %s2229_s3, %s1520_s28  ;;  %p1524_p5 = scmp.lt.u32.totalorder %s1520_s28, %s2229_s3 }
  0x66   :  { %p1526_p6 = pnand %p1524_p5, %p1521_p4 }
  0x68   :  { %1529 = shalt.err (!%p1526_p6)
}
  0x69   :  { %s1530_s26 = scalar_lea.vmem %s62_s27, 16  ;;  %s1534_s2 = scalar_lea.vmem %s62_s27, 32 }
  0x6a   :  { %p1531_p7 = scmp.ne.s32.totalorder %s62_s27, %s1530_s26  ;;  %p1535_p8 = scmp.lt.s32.totalorder %s62_s27, %s62_s27 }
  0x6b   :  { %p1536_p9 = scmp.lt.s32.totalorder %s1534_s2, %s1530_s26 }
  0x6d   :  { %p1537_p10 = por %p1536_p9, %p1535_p8 }
  0x6f   :  { %p1538_p11 = pnand %p1537_p10, %p1531_p7 }
  0x71   :  { %1541 = shalt.err (!%p1538_p11)
}
  0x72   :  { %64 = dma.hbm_to_vmem [thread:$0]  %s2229_s3, 16, %s62_s27, [#allocation5]  }
  0x73   :  { %s1542_s23 = scalar_lea.hbm %s2200_s7, 16 }
  0x74   :  { %p1543_p12 = scmp.ne.s32.totalorder %s2200_s7, %s1542_s23  ;;  %p1546_p13 = scmp.lt.u32.totalorder %s1542_s23, %s2200_s7 }
  0x76   :  { %p1548_p0 = pnand %p1546_p13, %p1543_p12 }
  0x78   :  { %1551 = shalt.err (!%p1548_p0)
}
  0x79   :  { %s1552_s0 = scalar_lea.vmem %s84_s25, 16  ;;  %s1556_s30 = scalar_lea.vmem %s84_s25, 32 }
  0x7a   :  { %p1553_p1 = scmp.ne.s32.totalorder %s84_s25, %s1552_s0  ;;  %p1557_p2 = scmp.lt.s32.totalorder %s84_s25, %s84_s25 }
  0x7b   :  { %p1558_p3 = scmp.lt.s32.totalorder %s1556_s30, %s1552_s0 }
  0x7d   :  { %p1559_p4 = por %p1558_p3, %p1557_p2 }
  0x7f   :  { %p1560_p5 = pnand %p1559_p4, %p1553_p1 }
  0x81   :  { %1563 = shalt.err (!%p1560_p5)
}
  0x82   :  { %86 = dma.hbm_to_vmem [thread:$0]  %s2200_s7, 16, %s84_s25, [#allocation8]  }
  0x83   :  { %s1624_s5 = smov [#allocation12]   ;;  %s1564_s8 = scalar_lea.hbm %s2208_s15, 2048 }
  0x84   :  { %s114_s26 = sshll.u32 %s1624_s5, 4  ;;  %p1565_p6 = scmp.ne.s32.totalorder %s2208_s15, %s1564_s8  ;;  %s115_s26 = int_to_ptr.vmem [resolvable:$true] %s114_s26 }
  0x85   :  { %p1568_p7 = scmp.lt.u32.totalorder %s1564_s8, %s2208_s15 }
  0x87   :  { %p1570_p8 = pnand %p1568_p7, %p1565_p6 }
  0x89   :  { %1573 = shalt.err (!%p1570_p8)
}
  0x8a   :  { %s1574_s1 = scalar_lea.vmem %s115_s26, 2048  ;;  %p1579_p10 = scmp.lt.s32.totalorder %s115_s26, %s115_s26 }
  0x8b   :  { %p1575_p9 = scmp.ne.s32.totalorder %s115_s26, %s1574_s1  ;;  %p1580_p11 = scmp.lt.s32.totalorder %s1574_s1, %s1574_s1 }
  0x8d   :  { %p1581_p12 = por %p1580_p11, %p1579_p10 }
  0x8f   :  { %p1582_p13 = pnand %p1581_p12, %p1575_p9 }
  0x91   :  { %1585 = shalt.err (!%p1582_p13)
}
  0x92   :  { %s1625_s7 = smov 128   ;;  %s1626_s25 = smov 8  }
  0x93   :  { %120 = dma.hbm_to_vmem [thread:$0]  %s2208_s15, 2048, %s115_s26, [#allocation11], %s1625_s7, %s1625_s7, %s1626_s25  }
  0x94   :  { %s1627_s0 = smov [#allocation13]   ;;  %s1586_s5 = scalar_lea.hbm %s2212_s19, 4096 }
  0x95   :  { %s132_s30 = sshll.u32 %s1627_s0, 4  ;;  %p1587_p0 = scmp.ne.s32.totalorder %s2212_s19, %s1586_s5  ;;  %s133_s30 = int_to_ptr.vmem [resolvable:$true] %s132_s30 }
  0x96   :  { %p1590_p1 = scmp.lt.u32.totalorder %s1586_s5, %s2212_s19 }
  0x98   :  { %p1592_p2 = pnand %p1590_p1, %p1587_p0 }
  0x9a   :  { %1595 = shalt.err (!%p1592_p2)
}
  0x9b   :  { %s1596_s6 = scalar_lea.vmem %s133_s30, 4096  ;;  %p1601_p4 = scmp.lt.s32.totalorder %s133_s30, %s133_s30 }
  0x9c   :  { %p1597_p3 = scmp.ne.s32.totalorder %s133_s30, %s1596_s6  ;;  %p1602_p5 = scmp.lt.s32.totalorder %s1596_s6, %s1596_s6 }
  0x9e   :  { %p1603_p6 = por %p1602_p5, %p1601_p4 }
  0xa0   :  { %p1604_p7 = pnand %p1603_p6, %p1597_p3 }
  0xa2   :  { %1607 = shalt.err (!%p1604_p7)
}
  0xa3   :  { %s1628_s15 = smov 256   ;;  %s1629_s26 = smov 16  }
  0xa4   :  { %138 = dma.hbm_to_vmem [thread:$0]  %s2212_s19, 4096, %s133_s30, [#allocation14], %s1628_s15, %s1628_s15, %s1629_s26  }
  0xa5   :  { %1608 = dma.done.wait [#allocation3], 16  }
  0xa6   :  { %1609 = vsyncadd [#allocation3], 4294967280 }
  0xa7   :  { %1610 = dma.done.wait [#allocation5], 32  }
  0xa8   :  { %1611 = vsyncadd [#allocation5], 4294967264 }
  0xa9   :  { %1612 = dma.done.wait [#allocation8], 32  }
  0xaa   :  { %1613 = vsyncadd [#allocation8], 4294967264 }
  0xab   :  { %1614 = dma.done.wait [#allocation11], 2064  }
  0xac   :  { %1615 = vsyncadd [#allocation11], 4294965232 }
  0xad   :  { %1616 = dma.done.wait [#allocation14], 4096  }
  0xae   :  { %1617 = vsyncadd [#allocation14], 4294963200  ;;  %s2230_s25 = sld [smem:[#allocation21_spill]]  ;;  %s2231_s6 = sld [smem:[#allocation20_spill]]  ;;  %v987_v26 = vld [vmem:[#allocation2] ss:$0 sm:$0xff] }
  0xaf   :  { %s2232_s7 = sld [smem:[#allocation25_spill]]  ;;  %v569_v63 = vld [vmem:[%s2204_s11] sm:$0xff] }
  0xb4   :  { %v167_v0 = vld [vmem:[%s2230_s25] sm:$0xff]  ;;  %v168_v1 = vld [vmem:[%s2230_s25 + $0x8] sm:$0xff]  ;;  %v169_v2 = vld [vmem:[%s2230_s25 + $0x10] sm:$0xff] }
  0xb5   :  { %v1211_v3 = vpack.c.bf16 %v168_v1, %v167_v0  ;;  %v170_v4 = vld [vmem:[%s2230_s25 + $0x18] sm:$0xff]  ;;  %v171_v6 = vld [vmem:[%s2230_s25 + $0x20] sm:$0xff]  ;;  %v172_v7 = vld [vmem:[%s2230_s25 + $0x28] sm:$0xff] }
  0xb6   :  { %v1215_v5 = vpack.c.bf16 %v170_v4, %v169_v2  ;;  %v1219_v8 = vpack.c.bf16 %v172_v7, %v171_v6  ;;  %v1858_v9 = vld [vmem:[%s2231_s6] sm:$0xff]  ;;  %v173_v10 = vld [vmem:[%s2230_s25 + $0x30] sm:$0xff]  ;;  %v174_v11 = vld [vmem:[%s2230_s25 + $0x38] sm:$0xff] }
  0xb7   :  { %1212 = vmatprep.subr.bf16.mxu0 %v1211_v3  ;;  %1103 = vmatprep.mubr.f32.mxu0 %v1858_v9  ;;  %v1223_v12 = vpack.c.bf16 %v174_v11, %v173_v10  ;;  %v175_v13 = vld [vmem:[%s2230_s25 + $0x40] sm:$0xff]  ;;  %v176_v14 = vld [vmem:[%s2230_s25 + $0x48] sm:$0xff]  ;;  %v177_v16 = vld [vmem:[%s2230_s25 + $0x50] sm:$0xff] }
  0xb8   :  { %1214 = vmatpush3.bf16.msra.mxu0 %v1211_v3  ;;  %v1227_v15 = vpack.c.bf16 %v176_v14, %v175_v13  ;;  %v178_v17 = vld [vmem:[%s2230_s25 + $0x58] sm:$0xff]  ;;  %v179_v19 = vld [vmem:[%s2230_s25 + $0x60] sm:$0xff]  ;;  %v180_v20 = vld [vmem:[%s2230_s25 + $0x68] sm:$0xff] }
  0xb9   :  { %1216 = vmatprep.subr.bf16.mxu0 %v1215_v5  ;;  %v1231_v18 = vpack.c.bf16 %v178_v17, %v177_v16  ;;  %v1235_v21 = vpack.c.bf16 %v180_v20, %v179_v19  ;;  %v181_v22 = vld [vmem:[%s2230_s25 + $0x70] sm:$0xff]  ;;  %v182_v23 = vld [vmem:[%s2230_s25 + $0x78] sm:$0xff]  ;;  %v1894_v25 = vld [vmem:[%s2231_s6 + $0x8] sm:$0xff] }
  0xba   :  { %v1239_v24 = vpack.c.bf16 %v182_v23, %v181_v22  ;;  %v308_v31 = vld [vmem:[%s2232_s7] sm:$0xff]  ;;  %v309_v32 = vld [vmem:[%s2232_s7 + $0x8] sm:$0xff]  ;;  %v310_v33 = vld [vmem:[%s2232_s7 + $0x10] sm:$0xff] }
  0xbb   :  { %v1243_v34 = vpack.c.bf16 %v309_v32, %v308_v31  ;;  %v311_v35 = vld [vmem:[%s2232_s7 + $0x18] sm:$0xff]  ;;  %v312_v45 = vld [vmem:[%s2232_s7 + $0x20] sm:$0xff]  ;;  %v313_v46 = vld [vmem:[%s2232_s7 + $0x28] sm:$0xff] }
  0xbc   :  { %1218 = vmatpush3.bf16.msra.mxu0 %v1215_v5  ;;  %v1247_v36 = vpack.c.bf16 %v311_v35, %v310_v33  ;;  %v1251_v47 = vpack.c.bf16 %v313_v46, %v312_v45  ;;  %v314_v48 = vld [vmem:[%s2232_s7 + $0x30] sm:$0xff]  ;;  %v315_v49 = vld [vmem:[%s2232_s7 + $0x38] sm:$0xff]  ;;  %v316_v51 = vld [vmem:[%s2232_s7 + $0x40] sm:$0xff] }
  0xbd   :  { %1220 = vmatprep.subr.bf16.mxu0 %v1219_v8  ;;  %1244 = vmatprep.subr.bf16.mxu1 %v1243_v34  ;;  %v1255_v50 = vpack.c.bf16 %v315_v49, %v314_v48  ;;  %v317_v52 = vld [vmem:[%s2232_s7 + $0x48] sm:$0xff]  ;;  %v318_v54 = vld [vmem:[%s2232_s7 + $0x50] sm:$0xff]  ;;  %v319_v55 = vld [vmem:[%s2232_s7 + $0x58] sm:$0xff] }
  0xbe   :  { %1246 = vmatpush3.bf16.msra.mxu1 %v1243_v34  ;;  %v1259_v53 = vpack.c.bf16 %v317_v52, %v316_v51  ;;  %v1263_v56 = vpack.c.bf16 %v319_v55, %v318_v54  ;;  %v320_v57 = vld [vmem:[%s2232_s7 + $0x60] sm:$0xff]  ;;  %v321_v58 = vld [vmem:[%s2232_s7 + $0x68] sm:$0xff]  ;;  %v322_v60 = vld [vmem:[%s2232_s7 + $0x70] sm:$0xff] }
  0xbf   :  { %1248 = vmatprep.subr.bf16.mxu1 %v1247_v36  ;;  %v1267_v59 = vpack.c.bf16 %v321_v58, %v320_v57  ;;  %v323_v61 = vld [vmem:[%s2232_s7 + $0x78] sm:$0xff]  ;;  %v570_v0 = vld [vmem:[%s2204_s11 + $0x8] sm:$0xff]  ;;  %v988_v10 = vld [vmem:[#allocation4] ss:$0 sm:$0xff] }
  0xc0   :  { %1222 = vmatpush3.bf16.msra.mxu0 %v1219_v8  ;;  %v1271_v62 = vpack.c.bf16 %v323_v61, %v322_v60  ;;  %v1307_v1 = vpack.c.bf16 %v570_v0, %v569_v63  ;;  %v571_v19 = vld [vmem:[%s2204_s11 + $0x10] sm:$0xff]  ;;  %v572_v20 = vld [vmem:[%s2204_s11 + $0x18] sm:$0xff]  ;;  %v577_v31 = vld [vmem:[%s2204_s11 + $0x40] sm:$0xff] }
  0xc1   :  { %1224 = vmatprep.subr.bf16.mxu0 %v1223_v12  ;;  %v1311_v23 = vpack.c.bf16 %v572_v20, %v571_v19  ;;  %v579_v33 = vld [vmem:[%s2204_s11 + $0x50] sm:$0xff]  ;;  %v580_v34 = vld [vmem:[%s2204_s11 + $0x58] sm:$0xff]  ;;  %v452_v60 = vld [vmem:[%s2202_s9 + $0x20] sm:$0xff] }
  0xc2   :  { %1250 = vmatpush3.bf16.msra.mxu1 %v1247_v36  ;;  %v1327_v35 = vpack.c.bf16 %v580_v34, %v579_v33  ;;  %v581_v36 = vld [vmem:[%s2204_s11 + $0x60] sm:$0xff]  ;;  %v451_v52 = vld [vmem:[%s2202_s9 + $0x18] sm:$0xff]  ;;  %v450_v55 = vld [vmem:[%s2202_s9 + $0x10] sm:$0xff] }
  0xc3   :  { %1252 = vmatprep.subr.bf16.mxu1 %v1251_v47  ;;  %v455_v57 = vld [vmem:[%s2202_s9 + $0x38] sm:$0xff]  ;;  %v454_v61 = vld [vmem:[%s2202_s9 + $0x30] sm:$0xff]  ;;  %v465_v20 = vld [vmem:[%s2202_s9 + $0x88] sm:$0xff] }
  0xc4   :  { %1226 = vmatpush3.bf16.msra.mxu0 %v1223_v12  ;;  %v989_v12 = vld [vmem:[#allocation6] ss:$0 sm:$0xff]  ;;  %v475_v33 = vld [vmem:[%s2202_s9 + $0xd8] sm:$0xff] }
  0xc5   :  { %1228 = vmatprep.subr.bf16.mxu0 %v1227_v15 }
  0xc6   :  { %1254 = vmatpush3.bf16.msra.mxu1 %v1251_v47  ;;  %v993_v47 = vld [vmem:[%s2205_s12] ss:$0 sm:$0xff] }
  0xc7   :  { %1256 = vmatprep.subr.bf16.mxu1 %v1255_v50 }
  0xc8   :  { %1230 = vmatpush3.bf16.msra.mxu0 %v1227_v15 }
  0xc9   :  { %1232 = vmatprep.subr.bf16.mxu0 %v1231_v18 }
  0xca   :  { %1258 = vmatpush3.bf16.msra.mxu1 %v1255_v50 }
  0xcb   :  { %1260 = vmatprep.subr.bf16.mxu1 %v1259_v53 }
  0xcc   :  { %1234 = vmatpush3.bf16.msra.mxu0 %v1231_v18 }
  0xcd   :  { %1236 = vmatprep.subr.bf16.mxu0 %v1235_v21 }
  0xce   :  { %1262 = vmatpush3.bf16.msra.mxu1 %v1259_v53  ;;  %v448_v53 = vld [vmem:[%s2202_s9] sm:$0xff] }
  0xcf   :  { %1264 = vmatprep.subr.bf16.mxu1 %v1263_v56  ;;  %v1277_v58 = vpack.c.bf16 %v450_v55, %v448_v53  ;;  %v710_v53 = vld [vmem:[#allocation12 + $0x8] sm:$0xff] }
  0xd0   :  { %1238 = vmatpush3.bf16.msra.mxu0 %v1235_v21 }
  0xd1   :  { %1240 = vmatprep.subr.bf16.mxu0 %v1239_v24 }
  0xd2   :  { %1266 = vmatpush3.bf16.msra.mxu1 %v1263_v56  ;;  %v453_v56 = vld [vmem:[%s2202_s9 + $0x28] sm:$0xff] }
  0xd3   :  { %1268 = vmatprep.subr.bf16.mxu1 %v1267_v59 }
  0xd4   :  { %1242 = vmatpush3.bf16.msra.mxu0 %v1239_v24  ;;  %v573_v24 = vld [vmem:[%s2204_s11 + $0x20] sm:$0xff] }
  0xd6   :  { %1270 = vmatpush3.bf16.msra.mxu1 %v1267_v59  ;;  %v1279_v59 = vpack.c.bf16 %v455_v57, %v453_v56 }
  0xd7   :  { %1104 = vmatmul.mubr.f32.vlgmr.msra.gmra.mrb[0].mxu0 %v1894_v25  ;;  %1272 = vmatprep.subr.bf16.mxu1 %v1271_v62 }
  0xda   :  { %1274 = vmatpush3.bf16.msra.mxu1 %v1271_v62  ;;  %v1281_v62 = vpack.c.bf16 %v454_v61, %v452_v60 }
  0xdb   :  { %1308 = vmatprep.subr.bf16.mxu1 %v1307_v1 }
 0x1aa   :  { %v1105_v27 = vpop.f32.mrb[0].mxu0 }
 0x1ab   :  { %v256_v28 = vpop.f32.mrb[1].mxu0  ;;  %v262_v30 = vadd.f32 %v1105_v27, %v987_v26 }
 0x1ac   :  { %v257_v29 = vadd.f32 %v987_v26, %v256_v28  ;;  %v574_v26 = vld [vmem:[%s2204_s11 + $0x28] sm:$0xff]  ;;  %v575_v28 = vld [vmem:[%s2204_s11 + $0x30] sm:$0xff] }
 0x1ad   :  { %v1315_v27 = vpack.c.bf16 %v574_v26, %v573_v24  ;;  %v466_v24 = vld [vmem:[%s2202_s9 + $0x90] sm:$0xff]  ;;  %v469_v26 = vld [vmem:[%s2202_s9 + $0xa8] sm:$0xff] }
 0x1ae   :  { %267 = vadd.xlane.f32.xlu0 %v257_v29 }
 0x1b2   :  { %269 = vadd.xlane.f32.xlu0 %v262_v30 }
 0x23b   :  { %v268_v37 = vpop.xlane.xlu0 %267 }
 0x23c   :  { %v272_v38 = vmul.f32 0.0078125, %v268_v37  ;;  %v582_v37 = vld [vmem:[%s2204_s11 + $0x68] sm:$0xff] }
 0x23e   :  { %v274_v39 = vsub.f32 %v257_v29, %v272_v38  ;;  %v576_v29 = vld [vmem:[%s2204_s11 + $0x38] sm:$0xff]  ;;  %v1331_v38 = vpack.c.bf16 %v582_v37, %v581_v36  ;;  %v472_v37 = vld [vmem:[%s2202_s9 + $0xc0] sm:$0xff] }
 0x23f   :  { %v270_v40 = vpop.xlane.xlu0 %269 }
 0x240   :  { %v273_v41 = vmul.f32 0.0078125, %v270_v40  ;;  %v276_v42 = vmul.f32 %v274_v39, %v274_v39  ;;  %v584_v40 = vld [vmem:[%s2204_s11 + $0x78] sm:$0xff] }
 0x242   :  { %v275_v43 = vsub.f32 %v262_v30, %v273_v41  ;;  %278 = vadd.xlane.f32.xlu1 %v276_v42  ;;  %v1319_v30 = vpack.c.bf16 %v576_v29, %v575_v28  ;;  %v990_v42 = vld [vmem:[#allocation7] ss:$0 sm:$0xff]  ;;  %v1630_v28 = vmov 0.0  }
 0x243   :  { %556 = vmatprep.mubr.f32.mxu0 %v1630_v28 }
 0x244   :  { %v277_v44 = vmul.f32 %v275_v43, %v275_v43 }
 0x246   :  { %280 = vadd.xlane.f32.xlu1 %v277_v44 }
 0x2cf   :  { %v279_v2 = vpop.xlane.xlu1 %278 }
 0x2d0   :  { %v282_v3 = vmul.f32 0.0078125, %v279_v2 }
 0x2d2   :  { %v284_v4 = vadd.f32 1e-05, %v282_v3 }
 0x2d3   :  { %v281_v5 = vpop.xlane.xlu1 %280 }
 0x2d4   :  { %1416 = vrsqrt.f32 %v284_v4  ;;  %v283_v6 = vmul.f32 0.0078125, %v281_v5 }
 0x2d6   :  { %v285_v7 = vadd.f32 1e-05, %v283_v6 }
 0x2d8   :  { %1418 = vrsqrt.f32 %v285_v7  ;;  %v457_v7 = vld [vmem:[%s2202_s9 + $0x48] sm:$0xff] }
 0x2de   :  { %v1417_v8 = vpop.eup %1416 }
 0x2df   :  { %v288_v11 = vmul.f32 %v1417_v8, %v274_v39  ;;  %v583_v39 = vld [vmem:[%s2204_s11 + $0x70] sm:$0xff]  ;;  %v459_v8 = vld [vmem:[%s2202_s9 + $0x58] sm:$0xff] }
 0x2e0   :  { %v1335_v41 = vpack.c.bf16 %v584_v40, %v583_v39 }
 0x2e1   :  { %v296_v13 = vmul.f32 %v988_v10, %v288_v11  ;;  %v456_v11 = vld [vmem:[%s2202_s9 + $0x40] sm:$0xff] }
 0x2e2   :  { %v1419_v14 = vpop.eup %1418 }
 0x2e3   :  { %v289_v15 = vmul.f32 %v1419_v14, %v275_v43  ;;  %v304_v16 = vadd.f32 %v989_v12, %v296_v13  ;;  %v461_v14 = vld [vmem:[%s2202_s9 + $0x68] sm:$0xff] }
 0x2e5   :  { %v297_v17 = vmul.f32 %v988_v10, %v289_v15  ;;  %v306_v18 = vmax.f32 %v304_v16, 0.0  ;;  %v1283_v10 = vpack.c.bf16 %v459_v8, %v457_v7  ;;  %v463_v15 = vld [vmem:[%s2202_s9 + $0x78] sm:$0xff]  ;;  %v712_v8 = vld [vmem:[#allocation12 + $0x18] sm:$0xff] }
 0x2e6   :  { %v1287_v16 = vpack.c.bf16 %v463_v15, %v461_v14  ;;  %v711_v7 = vld [vmem:[#allocation12 + $0x10] sm:$0xff]  ;;  %v713_v14 = vld [vmem:[#allocation12 + $0x20] sm:$0xff]  ;;  %v714_v15 = vld [vmem:[#allocation12 + $0x28] sm:$0xff] }
 0x2e7   :  { %v305_v21 = vadd.f32 %v989_v12, %v297_v17  ;;  %1138 = vmatprep.mubr.f32.mxu1 %v306_v18  ;;  %v458_v12 = vld [vmem:[%s2202_s9 + $0x50] sm:$0xff]  ;;  %v460_v17 = vld [vmem:[%s2202_s9 + $0x60] sm:$0xff] }
 0x2e8   :  { %v1285_v13 = vpack.c.bf16 %v458_v12, %v456_v11  ;;  %v462_v18 = vld [vmem:[%s2202_s9 + $0x70] sm:$0xff] }
 0x2e9   :  { %v307_v22 = vmax.f32 %v305_v21, 0.0  ;;  %v1289_v19 = vpack.c.bf16 %v462_v18, %v460_v17  ;;  %v467_v21 = vld [vmem:[%s2202_s9 + $0x98] sm:$0xff] }
 0x2ea   :  { %v715_v17 = vld [vmem:[#allocation12 + $0x30] sm:$0xff] }
 0x2eb   :  { %1139 = vmatmul.mubr.f32.vlgmr.msra.gmra.mrb[0].mxu1 %v307_v22  ;;  %v464_v22 = vld [vmem:[%s2202_s9 + $0x80] sm:$0xff] }
 0x2ec   :  { %1310 = vmatpush3.bf16.msra.mxu1 %v1307_v1  ;;  %1173 = vmatprep.mubr.f32.mxu1 %v1858_v9  ;;  %v578_v9 = vld [vmem:[%s2204_s11 + $0x48] sm:$0xff]  ;;  %v1293_v29 = vpack.c.bf16 %v466_v24, %v464_v22 }
 0x2ed   :  { %1312 = vmatprep.subr.bf16.mxu1 %v1311_v23  ;;  %v1323_v32 = vpack.c.bf16 %v578_v9, %v577_v31  ;;  %v468_v31 = vld [vmem:[%s2202_s9 + $0xa0] sm:$0xff]  ;;  %v470_v9 = vld [vmem:[%s2202_s9 + $0xb0] sm:$0xff] }
 0x2ee   :  { %v1297_v34 = vpack.c.bf16 %v470_v9, %v468_v31  ;;  %v720_v31 = vld [vmem:[#allocation12 + $0x58] sm:$0xff] }
 0x2f0   :  { %1314 = vmatpush3.bf16.msra.mxu1 %v1311_v23  ;;  %v1291_v23 = vpack.c.bf16 %v467_v21, %v465_v20  ;;  %v717_v20 = vld [vmem:[#allocation12 + $0x40] sm:$0xff]  ;;  %v718_v21 = vld [vmem:[#allocation12 + $0x48] sm:$0xff] }
 0x2f1   :  { %1316 = vmatprep.subr.bf16.mxu1 %v1315_v27 }
 0x2f4   :  { %1318 = vmatpush3.bf16.msra.mxu1 %v1315_v27  ;;  %v471_v27 = vld [vmem:[%s2202_s9 + $0xb8] sm:$0xff] }
 0x2f5   :  { %1320 = vmatprep.subr.bf16.mxu1 %v1319_v30 }
 0x2f8   :  { %1322 = vmatpush3.bf16.msra.mxu1 %v1319_v30  ;;  %v1295_v30 = vpack.c.bf16 %v471_v27, %v469_v26  ;;  %v1355_v27 = vpack.c.bf16 %v718_v21, %v717_v20 }
 0x2f9   :  { %1324 = vmatprep.subr.bf16.mxu1 %v1323_v32 }
 0x2fc   :  { %1326 = vmatpush3.bf16.msra.mxu1 %v1323_v32  ;;  %v473_v32 = vld [vmem:[%s2202_s9 + $0xc8] sm:$0xff] }
 0x2fd   :  { %1328 = vmatprep.subr.bf16.mxu1 %v1327_v35  ;;  %v1299_v36 = vpack.c.bf16 %v475_v33, %v473_v32  ;;  %v721_v32 = vld [vmem:[#allocation12 + $0x60] sm:$0xff]  ;;  %v722_v33 = vld [vmem:[#allocation12 + $0x68] sm:$0xff] }
 0x300   :  { %1330 = vmatpush3.bf16.msra.mxu1 %v1327_v35 }
 0x301   :  { %1332 = vmatprep.subr.bf16.mxu1 %v1331_v38 }
 0x304   :  { %1334 = vmatpush3.bf16.msra.mxu1 %v1331_v38  ;;  %v474_v38 = vld [vmem:[%s2202_s9 + $0xd0] sm:$0xff] }
 0x305   :  { %1336 = vmatprep.subr.bf16.mxu1 %v1335_v41 }
 0x308   :  { %1338 = vmatpush3.bf16.msra.mxu1 %v1335_v41  ;;  %v477_v41 = vld [vmem:[%s2202_s9 + $0xe8] sm:$0xff] }
 0x30b   :  { %1174 = vmatmul.mubr.f32.vlgmr.msra.gmra.mrb[2].mxu1 %v1894_v25  ;;  %v449_v25 = vld [vmem:[%s2202_s9 + $0x8] sm:$0xff] }
 0x30c   :  { %v1275_v54 = vpack.c.bf16 %v451_v52, %v449_v25  ;;  %957 = vmatprep.mubr.f32.mxu1 %v1630_v28  ;;  %v709_v52 = vld [vmem:[#allocation12] sm:$0xff] }
 0x30e   :  { %1276 = vmatprep.subr.bf16.mxu0 %v1275_v54  ;;  %v1339_v54 = vpack.c.bf16 %v710_v53, %v709_v52 }
 0x30f   :  { %1278 = vmatpush1.bf16.msra.mxu0 %v1277_v58 }
 0x310   :  { %1280 = vmatprep.subr.bf16.mxu0 %v1279_v59 }
 0x313   :  { %1282 = vmatpush1.bf16.msra.mxu0 %v1281_v62 }
 0x314   :  { %1284 = vmatprep.subr.bf16.mxu0 %v1283_v10 }
 0x317   :  { %1286 = vmatpush1.bf16.msra.mxu0 %v1285_v13  ;;  %v1343_v13 = vpack.c.bf16 %v712_v8, %v711_v7  ;;  %v850_v7 = vld [vmem:[#allocation13 + $0x8] sm:$0xff]  ;;  %v852_v8 = vld [vmem:[#allocation13 + $0x18] sm:$0xff] }
 0x318   :  { %1288 = vmatprep.subr.bf16.mxu0 %v1287_v16 }
 0x31b   :  { %1290 = vmatpush1.bf16.msra.mxu0 %v1289_v19 }
 0x31c   :  { %1292 = vmatprep.subr.bf16.mxu0 %v1291_v23 }
 0x31f   :  { %1294 = vmatpush1.bf16.msra.mxu0 %v1293_v29 }
 0x320   :  { %1296 = vmatprep.subr.bf16.mxu0 %v1295_v30  ;;  %v719_v30 = vld [vmem:[#allocation12 + $0x50] sm:$0xff] }
 0x321   :  { %v1359_v9 = vpack.c.bf16 %v720_v31, %v719_v30  ;;  %v857_v31 = vld [vmem:[#allocation13 + $0x40] sm:$0xff] }
 0x323   :  { %1298 = vmatpush1.bf16.msra.mxu0 %v1297_v34  ;;  %v1363_v34 = vpack.c.bf16 %v722_v33, %v721_v32  ;;  %v862_v33 = vld [vmem:[#allocation13 + $0x68] sm:$0xff] }
 0x324   :  { %1300 = vmatprep.subr.bf16.mxu0 %v1299_v36  ;;  %v724_v36 = vld [vmem:[#allocation12 + $0x78] sm:$0xff] }
 0x3be   :  { %v1140_v43 = vpop.f32.mrb[0].mxu1 }
 0x3bf   :  { %v403_v44 = vadd.f32 %v1140_v43, %v990_v42  ;;  %v397_v45 = vpop.f32.mrb[1].mxu1 }
 0x3c0   :  { %v398_v46 = vadd.f32 %v990_v42, %v397_v45  ;;  %v479_v42 = vld [vmem:[%s2202_s9 + $0xf8] sm:$0xff]  ;;  %v1301_v45 = vpack.c.bf16 %v474_v38, %v472_v37 }
 0x3c1   :  { %410 = vadd.xlane.f32.xlu1 %v403_v44 }
 0x3c2   :  { %408 = vadd.xlane.f32.xlu0 %v398_v46  ;;  %1302 = vmatpush1.bf16.msra.mxu0 %v1301_v45 }
 0x3de   :  { %v1175_v48 = vpop.f32.mrb[2].mxu1 }
 0x3df   :  { %v1998_v49 = vadd.f32 %v1175_v48, %v993_v47  ;;  %v658_v50 = vpop.f32.mrb[3].mxu1  ;;  %v476_v48 = vld [vmem:[%s2202_s9 + $0xe0] sm:$0xff] }
 0x3e0   :  { %v2000_v51 = vadd.f32 %v993_v47, %v658_v50  ;;  %v1303_v47 = vpack.c.bf16 %v479_v42, %v477_v41  ;;  %v478_v50 = vld [vmem:[%s2202_s9 + $0xf0] sm:$0xff]  ;;  %v995_v42 = vld [vmem:[%s2207_s14] ss:$0 sm:$0xff] }
 0x3e1   :  { %671 = vadd.xlane.f32.xlu1 %v1998_v49 }
 0x3e2   :  { %669 = vadd.xlane.f32.xlu0 %v2000_v51  ;;  %1304 = vmatprep.subr.bf16.mxu0 %v1303_v47 }
 0x44e   :  { %v411_v63 = vpop.xlane.xlu1 %410 }
 0x44f   :  { %v413_v0 = vmul.f32 0.0078125, %v411_v63  ;;  %v409_v1 = vpop.xlane.xlu0 %408  ;;  %v991_v63 = vld [vmem:[#allocation9] ss:$0 sm:$0xff] }
 0x450   :  { %v412_v2 = vmul.f32 0.0078125, %v409_v1 }
 0x451   :  { %v2028_v3 = vsub.f32 %v403_v44, %v413_v0 }
 0x452   :  { %v2030_v4 = vsub.f32 %v398_v46, %v412_v2  ;;  %v992_v2 = vld [vmem:[#allocation10] ss:$0 sm:$0xff] }
 0x453   :  { %v417_v5 = vmul.f32 %v2028_v3, %v2028_v3 }
 0x454   :  { %v416_v6 = vmul.f32 %v2030_v4, %v2030_v4 }
 0x455   :  { %420 = vadd.xlane.f32.xlu1 %v417_v5 }
 0x456   :  { %418 = vadd.xlane.f32.xlu0 %v416_v6 }
 0x46e   :  { %v672_v35 = vpop.xlane.xlu1 %671 }
 0x46f   :  { %v674_v39 = vmul.f32 0.0078125, %v672_v35  ;;  %v670_v40 = vpop.xlane.xlu0 %669  ;;  %v723_v35 = vld [vmem:[#allocation12 + $0x70] sm:$0xff] }
 0x470   :  { %v673_v43 = vmul.f32 0.0078125, %v670_v40  ;;  %v1367_v38 = vpack.c.bf16 %v724_v36, %v723_v35  ;;  %v861_v36 = vld [vmem:[#allocation13 + $0x60] sm:$0xff] }
 0x471   :  { %v2105_v44 = vsub.f32 %v1998_v49, %v674_v39  ;;  %v994_v39 = vld [vmem:[%s2206_s13] ss:$0 sm:$0xff] }
 0x472   :  { %v2108_v46 = vsub.f32 %v2000_v51, %v673_v43  ;;  %v1305_v51 = vpack.c.bf16 %v478_v50, %v476_v48 }
 0x473   :  { %v678_v25 = vmul.f32 %v2105_v44, %v2105_v44 }
 0x474   :  { %v677_v49 = vmul.f32 %v2108_v46, %v2108_v46  ;;  %1306 = vmatpush1.bf16.msra.mxu0 %v1305_v51  ;;  %v482_v51 = vlaneseq }
 0x475   :  { %681 = vadd.xlane.f32.xlu1 %v678_v25  ;;  %1340 = vmatprep.subr.bf16.mxu0 %v1339_v54 }
 0x476   :  { %679 = vadd.xlane.f32.xlu0 %v677_v49  ;;  %v2131_v52 = vshrl.u32 %v482_v51, 7 }
 0x478   :  { %v488_v53 = vsub.s32 1, %v2131_v52 }
 0x4e2   :  { %v421_v55 = vpop.xlane.xlu1 %420 }
 0x4e3   :  { %v423_v56 = vmul.f32 0.0078125, %v421_v55  ;;  %v419_v57 = vpop.xlane.xlu0 %418 }
 0x4e4   :  { %v422_v58 = vmul.f32 0.0078125, %v419_v57 }
 0x4e5   :  { %v425_v59 = vadd.f32 1e-05, %v423_v56 }
 0x4e6   :  { %v424_v60 = vadd.f32 1e-05, %v422_v58 }
 0x4e7   :  { %1420 = vrsqrt.f32 %v425_v59 }
 0x4e8   :  { %1422 = vrsqrt.f32 %v424_v60 }
 0x4f1   :  { %v1421_v61 = vpop.eup %1420 }
 0x4f2   :  { %v1423_v62 = vpop.eup %1422  ;;  %v429_v0 = vmul.f32 %v1421_v61, %v2028_v3  ;;  %v1347_v3 = vpack.c.bf16 %v714_v15, %v713_v14  ;;  %v856_v14 = vld [vmem:[#allocation13 + $0x38] sm:$0xff] }
 0x4f3   :  { %v428_v1 = vmul.f32 %v1423_v62, %v2030_v4  ;;  %v716_v4 = vld [vmem:[#allocation12 + $0x38] sm:$0xff] }
 0x4f4   :  { %v437_v6 = vmul.f32 %v991_v63, %v429_v0  ;;  %v1351_v18 = vpack.c.bf16 %v716_v4, %v715_v17  ;;  %v996_v0 = vld [vmem:[%s2209_s16] ss:$0 sm:$0xff] }
 0x4f5   :  { %v436_v5 = vmul.f32 %v991_v63, %v428_v1  ;;  %v855_v17 = vld [vmem:[#allocation13 + $0x30] sm:$0xff] }
 0x4f6   :  { %v445_v12 = vadd.f32 %v992_v2, %v437_v6 }
 0x4f7   :  { %v444_v10 = vadd.f32 %v992_v2, %v436_v5 }
 0x4f8   :  { %v447_v16 = vmax.f32 %v445_v12, 0.0  ;;  %v851_v12 = vld [vmem:[#allocation13 + $0x10] sm:$0xff] }
 0x4f9   :  { %v446_v11 = vmax.f32 %v444_v10, 0.0  ;;  %v849_v10 = vld [vmem:[#allocation13] sm:$0xff] }
 0x4fa   :  { %v1373_v15 = vpack.c.bf16 %v851_v12, %v849_v10  ;;  %v997_v12 = vld [vmem:[%s2210_s17] ss:$0 sm:$0xff] }
 0x4fb   :  { %557 = vmatmul.mubr.f32.vlgmr.msra.gmra.mrb[2].mxu0 %v446_v11  ;;  %v1371_v11 = vpack.c.bf16 %v852_v8, %v850_v7 }
 0x4fc   :  { %1342 = vmatpush3.bf16.msra.mxu0 %v1339_v54  ;;  %562 = vmatprep.mubr.f32.mxu0 %v1630_v28 }
 0x4fd   :  { %1344 = vmatprep.subr.bf16.mxu0 %v1343_v13  ;;  %1372 = vmatprep.subr.bf16.mxu1 %v1371_v11 }
 0x4fe   :  { %1374 = vmatpush1.bf16.msra.mxu1 %v1373_v15  ;;  %v998_v15 = vld [vmem:[%s2211_s18] ss:$0 sm:$0xff] }
 0x4ff   :  { %563 = vmatmul.mubr.f32.gmra.mrb[4].mxu0 %v447_v16 }
 0x500   :  { %1346 = vmatpush3.bf16.msra.mxu0 %v1343_v13  ;;  %v854_v13 = vld [vmem:[#allocation13 + $0x28] sm:$0xff] }
 0x501   :  { %1348 = vmatprep.subr.bf16.mxu0 %v1347_v3  ;;  %v1375_v16 = vpack.c.bf16 %v856_v14, %v854_v13 }
 0x502   :  { %v682_v19 = vpop.xlane.xlu1 %681 }
 0x503   :  { %v684_v22 = vmul.f32 0.0078125, %v682_v19  ;;  %v680_v23 = vpop.xlane.xlu0 %679  ;;  %1376 = vmatprep.subr.bf16.mxu1 %v1375_v16 }
 0x504   :  { %v683_v24 = vmul.f32 0.0078125, %v680_v23  ;;  %1350 = vmatpush3.bf16.msra.mxu0 %v1347_v3  ;;  %v853_v3 = vld [vmem:[#allocation13 + $0x20] sm:$0xff] }
 0x505   :  { %v686_v26 = vadd.f32 1e-05, %v684_v22  ;;  %1352 = vmatprep.subr.bf16.mxu0 %v1351_v18  ;;  %v1377_v4 = vpack.c.bf16 %v855_v17, %v853_v3 }
 0x506   :  { %v685_v29 = vadd.f32 1e-05, %v683_v24 }
 0x507   :  { %1424 = vrsqrt.f32 %v686_v26  ;;  %1378 = vmatpush1.bf16.msra.mxu1 %v1377_v4 }
 0x508   :  { %1426 = vrsqrt.f32 %v685_v29  ;;  %1354 = vmatpush3.bf16.msra.mxu0 %v1351_v18  ;;  %v860_v29 = vld [vmem:[#allocation13 + $0x58] sm:$0xff] }
 0x509   :  { %1356 = vmatprep.subr.bf16.mxu0 %v1355_v27 }
 0x50c   :  { %1358 = vmatpush3.bf16.msra.mxu0 %v1355_v27  ;;  %v858_v27 = vld [vmem:[#allocation13 + $0x48] sm:$0xff] }
 0x50d   :  { %1360 = vmatprep.subr.bf16.mxu0 %v1359_v9  ;;  %v1379_v30 = vpack.c.bf16 %v860_v29, %v858_v27 }
 0x50f   :  { %1380 = vmatprep.subr.bf16.mxu1 %v1379_v30 }
 0x510   :  { %1362 = vmatpush3.bf16.msra.mxu0 %v1359_v9  ;;  %v859_v9 = vld [vmem:[#allocation13 + $0x50] sm:$0xff] }
 0x511   :  { %v1425_v37 = vpop.eup %1424  ;;  %1364 = vmatprep.subr.bf16.mxu0 %v1363_v34  ;;  %v1381_v32 = vpack.c.bf16 %v859_v9, %v857_v31 }
 0x512   :  { %v1427_v40 = vpop.eup %1426  ;;  %v690_v41 = vmul.f32 %v1425_v37, %v2105_v44  ;;  %v484_v44 = vsub.s32 0, %v2131_v52  ;;  %v863_v37 = vld [vmem:[#allocation13 + $0x70] sm:$0xff] }
 0x513   :  { %v689_v43 = vmul.f32 %v1427_v40, %v2108_v46  ;;  %v480_v46 = vld [vmem:[%s2203_s10] sm:$0x3]  ;;  %1382 = vmatpush1.bf16.msra.mxu1 %v1381_v32  ;;  %v868_v40 = vld [vmem:[#allocation13 + $0x98] sm:$0xff] }
 0x514   :  { %1366 = vmatpush3.bf16.msra.mxu0 %v1363_v34  ;;  %v698_v45 = vmul.f32 %v994_v39, %v690_v41  ;;  %v485_v54 = vrot.slane %v480_v46, %v484_v44  ;;  %v489_v55 = vrot.slane %v480_v46, %v488_v53  ;;  %v864_v34 = vld [vmem:[#allocation13 + $0x78] sm:$0xff]  ;;  %v874_v46 = vld [vmem:[#allocation13 + $0xc8] sm:$0xff] }
 0x515   :  { %1368 = vmatprep.subr.bf16.mxu0 %v1367_v38  ;;  %v697_v47 = vmul.f32 %v994_v39, %v689_v43  ;;  %v1383_v35 = vpack.c.bf16 %v864_v34, %v862_v33  ;;  %v866_v39 = vld [vmem:[#allocation13 + $0x88] sm:$0xff]  ;;  %v867_v43 = vld [vmem:[#allocation13 + $0x90] sm:$0xff] }
 0x516   :  { %v706_v48 = vadd.f32 %v995_v42, %v698_v45  ;;  %v1387_v41 = vpack.c.bf16 %v868_v40, %v866_v39 }
 0x517   :  { %v705_v50 = vadd.f32 %v995_v42, %v697_v47  ;;  %1384 = vmatprep.subr.bf16.mxu1 %v1383_v35  ;;  %v865_v42 = vld [vmem:[#allocation13 + $0x80] sm:$0xff]  ;;  %v870_v47 = vld [vmem:[#allocation13 + $0xa8] sm:$0xff] }
 0x518   :  { %1370 = vmatpush3.bf16.msra.mxu0 %v1367_v38  ;;  %v708_v49 = vmax.f32 %v706_v48, 0.0  ;;  %v1385_v38 = vpack.c.bf16 %v863_v37, %v861_v36  ;;  %v1389_v45 = vpack.c.bf16 %v867_v43, %v865_v42  ;;  %v872_v48 = vld [vmem:[#allocation13 + $0xb8] sm:$0xff] }
 0x519   :  { %v707_v25 = vmax.f32 %v705_v50, 0.0  ;;  %v1391_v50 = vpack.c.bf16 %v872_v48, %v870_v47 }
 0x51a   :  { %1386 = vmatpush1.bf16.msra.mxu1 %v1385_v38 }
 0x51b   :  { %1208 = vmatprep.mubr.f32.mxu0 %v707_v25  ;;  %1388 = vmatprep.subr.bf16.mxu1 %v1387_v41  ;;  %v869_v25 = vld [vmem:[#allocation13 + $0xa0] sm:$0xff] }
 0x51c   :  { %1209 = vmatmul.mubr.f32.vlgmr.msra.gmra.mrb[6].mxu0 %v708_v49  ;;  %v871_v49 = vld [vmem:[#allocation13 + $0xb0] sm:$0xff] }
 0x51d   :  { %v1393_v51 = vpack.c.bf16 %v871_v49, %v869_v25 }
 0x51e   :  { %1390 = vmatpush1.bf16.msra.mxu1 %v1389_v45 }
 0x51f   :  { %1392 = vmatprep.subr.bf16.mxu1 %v1391_v50 }
 0x522   :  { %1394 = vmatpush1.bf16.msra.mxu1 %v1393_v51 }
 0x5ce   :  { %v558_v56 = vpop.f32.mrb[2].mxu0 }
 0x5cf   :  { %v559_v57 = vadd.f32 %v558_v56, %v485_v54  ;;  %v560_v58 = vpop.f32.mrb[3].mxu0  ;;  %v873_v56 = vld [vmem:[#allocation13 + $0xc0] sm:$0xff] }
 0x5d0   :  { %v561_v59 = vadd.f32 %v560_v58, %v489_v55 }
 0x5d1   :  { %970 = vst [vmem:[%s2214_s21] sm:$0xff] %v559_v57  ;;  %v875_v57 = vld [vmem:[#allocation13 + $0xd0] sm:$0xff] }
 0x5d2   :  { %971 = vst [vmem:[%s2214_s21 + $0x8] sm:$0xff] %v561_v59  ;;  %v564_v60 = vpop.f32.mrb[4].mxu0  ;;  %v1397_v58 = vpack.c.bf16 %v875_v57, %v873_v56  ;;  %v878_v59 = vld [vmem:[#allocation13 + $0xe8] sm:$0xff] }
 0x5d3   :  { %v565_v61 = vadd.f32 %v564_v60, %v485_v54  ;;  %v566_v62 = vpop.f32.mrb[5].mxu0  ;;  %v876_v54 = vld [vmem:[#allocation13 + $0xd8] sm:$0xff] }
 0x5d4   :  { %v567_v63 = vadd.f32 %v566_v62, %v489_v55  ;;  %v1395_v55 = vpack.c.bf16 %v876_v54, %v874_v46  ;;  %v880_v60 = vld [vmem:[#allocation13 + $0xf8] sm:$0xff] }
 0x5d5   :  { %972 = vst [vmem:[%s2214_s21 + $0x20] sm:$0xff] %v565_v61  ;;  %v877_v61 = vld [vmem:[#allocation13 + $0xe0] sm:$0xff]  ;;  %v1399_v62 = vpack.c.bf16 %v880_v60, %v878_v59 }
 0x5d6   :  { %973 = vst [vmem:[%s2214_s21 + $0x28] sm:$0xff] %v567_v63  ;;  %1396 = vmatprep.subr.bf16.mxu1 %v1395_v55  ;;  %v879_v63 = vld [vmem:[#allocation13 + $0xf0] sm:$0xff] }
 0x5d7   :  { %1398 = vmatpush1.bf16.msra.mxu1 %v1397_v58 }
 0x5d8   :  { %1400 = vmatprep.subr.bf16.mxu1 %v1399_v62 }
 0x5ef   :  { %v1210_v1 = vpop.f32.mrb[6].mxu0 }
 0x5f0   :  { %v804_v2 = vadd.f32 %v1210_v1, %v996_v0  ;;  %v798_v5 = vpop.f32.mrb[7].mxu0 }
 0x5f1   :  { %v799_v6 = vadd.f32 %v996_v0, %v798_v5  ;;  %v1401_v0 = vpack.c.bf16 %v879_v63, %v877_v61 }
 0x5f2   :  { %811 = vadd.xlane.f32.xlu1 %v804_v2 }
 0x5f3   :  { %809 = vadd.xlane.f32.xlu0 %v799_v6  ;;  %1402 = vmatpush1.bf16.msra.mxu1 %v1401_v0 }
 0x67f   :  { %v812_v18 = vpop.xlane.xlu1 %811 }
 0x680   :  { %v814_v19 = vmul.f32 0.0078125, %v812_v18  ;;  %v810_v20 = vpop.xlane.xlu0 %809 }
 0x681   :  { %v813_v21 = vmul.f32 0.0078125, %v810_v20  ;;  %v881_v20 = vld [vmem:[%s2213_s20] sm:$0x3] }
 0x682   :  { %v2157_v22 = vsub.f32 %v804_v2, %v814_v19 }
 0x683   :  { %v2159_v23 = vsub.f32 %v799_v6, %v813_v21  ;;  %v886_v21 = vrot.slane %v881_v20, %v484_v44 }
 0x684   :  { %v818_v24 = vmul.f32 %v2157_v22, %v2157_v22 }
 0x685   :  { %v817_v26 = vmul.f32 %v2159_v23, %v2159_v23 }
 0x686   :  { %821 = vadd.xlane.f32.xlu1 %v818_v24 }
 0x687   :  { %819 = vadd.xlane.f32.xlu0 %v817_v26 }
 0x713   :  { %v822_v1 = vpop.xlane.xlu1 %821 }
 0x714   :  { %v824_v2 = vmul.f32 0.0078125, %v822_v1  ;;  %v820_v5 = vpop.xlane.xlu0 %819 }
 0x715   :  { %v823_v6 = vmul.f32 0.0078125, %v820_v5 }
 0x716   :  { %v826_v7 = vadd.f32 1e-05, %v824_v2 }
 0x717   :  { %v825_v8 = vadd.f32 1e-05, %v823_v6 }
 0x718   :  { %1428 = vrsqrt.f32 %v826_v7 }
 0x719   :  { %1430 = vrsqrt.f32 %v825_v8 }
 0x722   :  { %v1429_v10 = vpop.eup %1428 }
 0x723   :  { %v1431_v11 = vpop.eup %1430  ;;  %v830_v13 = vmul.f32 %v1429_v10, %v2157_v22  ;;  %v890_v22 = vrot.slane %v881_v20, %v488_v53 }
 0x724   :  { %v829_v14 = vmul.f32 %v1431_v11, %v2159_v23 }
 0x725   :  { %v838_v3 = vmul.f32 %v997_v12, %v830_v13 }
 0x726   :  { %v837_v16 = vmul.f32 %v997_v12, %v829_v14 }
 0x727   :  { %v846_v18 = vadd.f32 %v998_v15, %v838_v3 }
 0x728   :  { %v845_v17 = vadd.f32 %v998_v15, %v837_v16 }
 0x729   :  { %v848_v19 = vmax.f32 %v846_v18, 0.0 }
 0x72a   :  { %v847_v4 = vmax.f32 %v845_v17, 0.0 }
 0x72c   :  { %958 = vmatmul.mubr.f32.vlgmr.msra.gmra.mrb[4].mxu1 %v847_v4 }
 0x72d   :  { %963 = vmatprep.mubr.f32.mxu1 %v1630_v28 }
 0x730   :  { %964 = vmatmul.mubr.f32.gmra.mrb[6].mxu1 %v848_v19 }
 0x7ff   :  { %v959_v23 = vpop.f32.mrb[4].mxu1 }
 0x800   :  { %v960_v24 = vadd.f32 %v959_v23, %v886_v21  ;;  %v961_v26 = vpop.f32.mrb[5].mxu1 }
 0x801   :  { %v962_v27 = vadd.f32 %v961_v26, %v890_v22 }
 0x802   :  { %974 = vst [vmem:[%s2214_s21 + $0x10] sm:$0xff] %v960_v24 }
 0x803   :  { %975 = vst [vmem:[%s2214_s21 + $0x18] sm:$0xff] %v962_v27  ;;  %v965_v28 = vpop.f32.mrb[6].mxu1 }
 0x804   :  { %v966_v29 = vadd.f32 %v965_v28, %v886_v21  ;;  %v967_v30 = vpop.f32.mrb[7].mxu1 }
 0x805   :  { %v968_v31 = vadd.f32 %v967_v30, %v890_v22 }
 0x806   :  { %976 = vst [vmem:[%s2214_s21 + $0x30] sm:$0xff] %v966_v29 }
 0x807   :  { %977 = vst [vmem:[%s2214_s21 + $0x38] sm:$0xff] %v968_v31 }
 0x808   :  { %982 = vsyncpa [#allocation3], 1 }
 0x809   :  { %983 = vsyncpa [#allocation5], 1 }
 0x80a   :  { %984 = vsyncpa [#allocation8], 1 }
 0x80b   :  { %985 = vsyncpa [#allocation11], 1 }
 0x80c   :  { %986 = vsyncpa [#allocation14], 1 }

// kernel: dual_encoder_decoder_forward.3
= control target key start
LH: loop header
LB: loop body
LE: loop exit
PB: predicated region body
PF: predicated region fallthrough
CT: control target
= control target key end

     0   :  { %s2433_s1 = inlined_call_operand.vmem [shape: f32[384,128], index: 1, kind: input, shape index: {}]   ;;  %s2434_s0 = inlined_call_operand.vmem [shape: f32[16,384], index: 0, kind: input, shape index: {}]   ;;  %s2435_s2 = inlined_call_operand.vmem [shape: f32[1,128], index: 2, kind: input, shape index: {}]   ;;  %s2436_s5 = inlined_call_operand.vmem [shape: f32[128,128], index: 5, kind: input, shape index: {}]   ;;  %s2437_s3 = inlined_call_operand.vmem [shape: f32[1,128], index: 3, kind: input, shape index: {}]   ;;  %s2438_s4 = inlined_call_operand.vmem [shape: f32[1,128], index: 4, kind: input, shape index: {}]   ;;  %s2439_s6 = inlined_call_operand.vmem [shape: f32[1,128], index: 6, kind: input, shape index: {}]   ;;  %s2440_s9 = inlined_call_operand.vmem [shape: f32[128,128], index: 9, kind: input, shape index: {}]   ;;  %s2441_s11 = inlined_call_operand.vmem [shape: f32[384,128], index: 11, kind: input, shape index: {}]   ;;  %s2442_s7 = inlined_call_operand.vmem [shape: f32[1,128], index: 7, kind: input, shape index: {}]   ;;  %s2443_s8 = inlined_call_operand.vmem [shape: f32[1,128], index: 8, kind: input, shape index: {}]   ;;  %s2444_s10 = inlined_call_operand.vmem [shape: f32[1,128], index: 10, kind: input, shape index: {}]   ;;  %s2445_s21 = inlined_call_operand.vmem [shape: f32[16,256], index: 21, kind: output, shape index: {}]   ;;  %s2446_s12 = inlined_call_operand.vmem [shape: f32[1,128], index: 12, kind: input, shape index: {}]   ;;  %s2447_s15 = inlined_call_operand.vmem [shape: f32[128,128], index: 15, kind: input, shape index: {}]   ;;  %s2448_s13 = inlined_call_operand.vmem [shape: f32[1,128], index: 13, kind: input, shape index: {}]   ;;  %s2449_s14 = inlined_call_operand.vmem [shape: f32[1,128], index: 14, kind: input, shape index: {}]   ;;  %s2450_s16 = inlined_call_operand.vmem [shape: f32[1,128], index: 16, kind: input, shape index: {}]   ;;  %s2451_s19 = inlined_call_operand.vmem [shape: f32[128,128], index: 19, kind: input, shape index: {}]   ;;  %s2452_s17 = inlined_call_operand.vmem [shape: f32[1,128], index: 17, kind: input, shape index: {}]   ;;  %s2453_s18 = inlined_call_operand.vmem [shape: f32[1,128], index: 18, kind: input, shape index: {}]   ;;  %s2454_s20 = inlined_call_operand.vmem [shape: f32[1,128], index: 20, kind: input, shape index: {}]  }
   0x1   :  { %2458 = sst [smem:[#allocation2_spill]] %s2433_s1 }
   0x2   :  { %2459 = sst [smem:[#allocation3_spill]] %s2434_s0  ;;  %s2464_s26 = sld [smem:[#allocation2_spill]] }
   0x3   :  { %2460 = sst [smem:[#allocation4_spill]] %s2435_s2  ;;  %s2465_s2 = sld [smem:[#allocation3_spill]] }
   0x4   :  { %2461 = sst [smem:[#allocation5_spill]] %s2436_s5  ;;  %s2466_s25 = sld [smem:[#allocation4_spill]] }
   0x5   :  { %2462 = sst [smem:[#allocation6_spill]] %s2437_s3  ;;  %s2467_s5 = sld [smem:[#allocation5_spill]] }
   0x6   :  { %2463 = sst [smem:[#allocation7_spill]] %s2438_s4  ;;  %s2468_s30 = sld [smem:[#allocation6_spill]] }
   0x7   :  { %s2469_s4 = sld [smem:[#allocation7_spill]] }
   0x8   :  { %v90_v0 = vld [vmem:[%s2464_s26 + $0x80] sm:$0xff]  ;;  %v91_v1 = vld [vmem:[%s2464_s26 + $0x88] sm:$0xff]  ;;  %v92_v9 = vld [vmem:[%s2464_s26 + $0x90] sm:$0xff] }
   0x9   :  { %v74_v2 = vld [vmem:[%s2464_s26] sm:$0xff]  ;;  %v1461_v3 = vpack.c.bf16 %v91_v1, %v90_v0  ;;  %v75_v4 = vld [vmem:[%s2464_s26 + $0x8] sm:$0xff]  ;;  %v93_v10 = vld [vmem:[%s2464_s26 + $0x98] sm:$0xff] }
   0xa   :  { %v106_v5 = vld [vmem:[%s2464_s26 + $0x100] sm:$0xff]  ;;  %v107_v6 = vld [vmem:[%s2464_s26 + $0x108] sm:$0xff]  ;;  %v1463_v7 = vpack.c.bf16 %v75_v4, %v74_v2  ;;  %v76_v11 = vld [vmem:[%s2464_s26 + $0x10] sm:$0xff]  ;;  %v1465_v12 = vpack.c.bf16 %v93_v10, %v92_v9 }
   0xb   :  { %v1493_v8 = vpack.c.bf16 %v107_v6, %v106_v5  ;;  %1462 = vmatprep.subr.bf16.mxu0 %v1461_v3  ;;  %v77_v13 = vld [vmem:[%s2464_s26 + $0x18] sm:$0xff]  ;;  %v108_v14 = vld [vmem:[%s2464_s26 + $0x110] sm:$0xff]  ;;  %v94_v18 = vld [vmem:[%s2464_s26 + $0xa0] sm:$0xff] }
   0xc   :  { %v109_v15 = vld [vmem:[%s2464_s26 + $0x118] sm:$0xff]  ;;  %1464 = vmatpush3.bf16.msra.mxu0 %v1463_v7  ;;  %v1467_v16 = vpack.c.bf16 %v77_v13, %v76_v11  ;;  %v95_v19 = vld [vmem:[%s2464_s26 + $0xa8] sm:$0xff]  ;;  %v78_v20 = vld [vmem:[%s2464_s26 + $0x20] sm:$0xff] }
   0xd   :  { %1494 = vmatprep.subr.bf16.mxu1 %v1493_v8  ;;  %v1497_v17 = vpack.c.bf16 %v109_v15, %v108_v14  ;;  %1466 = vmatprep.subr.bf16.mxu0 %v1465_v12  ;;  %v1469_v21 = vpack.c.bf16 %v95_v19, %v94_v18  ;;  %v79_v22 = vld [vmem:[%s2464_s26 + $0x28] sm:$0xff]  ;;  %v110_v23 = vld [vmem:[%s2464_s26 + $0x120] sm:$0xff]  ;;  %v96_v26 = vld [vmem:[%s2464_s26 + $0xb0] sm:$0xff] }
   0xe   :  { %1496 = vmatpush3.bf16.msra.mxu1 %v1493_v8  ;;  %v111_v24 = vld [vmem:[%s2464_s26 + $0x128] sm:$0xff]  ;;  %v97_v27 = vld [vmem:[%s2464_s26 + $0xb8] sm:$0xff]  ;;  %v112_v28 = vld [vmem:[%s2464_s26 + $0x130] sm:$0xff]  ;;  %v1471_v30 = vpack.c.bf16 %v79_v22, %v78_v20 }
   0xf   :  { %1498 = vmatprep.subr.bf16.mxu1 %v1497_v17  ;;  %v1501_v25 = vpack.c.bf16 %v111_v24, %v110_v23  ;;  %v113_v29 = vld [vmem:[%s2464_s26 + $0x138] sm:$0xff]  ;;  %v1473_v31 = vpack.c.bf16 %v97_v27, %v96_v26  ;;  %v80_v32 = vld [vmem:[%s2464_s26 + $0x30] sm:$0xff]  ;;  %v98_v35 = vld [vmem:[%s2464_s26 + $0xc0] sm:$0xff] }
  0x10   :  { %1468 = vmatpush3.bf16.msra.mxu0 %v1467_v16  ;;  %v81_v33 = vld [vmem:[%s2464_s26 + $0x38] sm:$0xff]  ;;  %v1505_v34 = vpack.c.bf16 %v113_v29, %v112_v28  ;;  %v99_v36 = vld [vmem:[%s2464_s26 + $0xc8] sm:$0xff]  ;;  %v114_v37 = vld [vmem:[%s2464_s26 + $0x140] sm:$0xff] }
  0x11   :  { %1470 = vmatprep.subr.bf16.mxu0 %v1469_v21  ;;  %v115_v38 = vld [vmem:[%s2464_s26 + $0x148] sm:$0xff]  ;;  %v1475_v39 = vpack.c.bf16 %v81_v33, %v80_v32  ;;  %v1477_v40 = vpack.c.bf16 %v99_v36, %v98_v35  ;;  %v82_v41 = vld [vmem:[%s2464_s26 + $0x40] sm:$0xff]  ;;  %v100_v44 = vld [vmem:[%s2464_s26 + $0xd0] sm:$0xff] }
  0x12   :  { %1500 = vmatpush3.bf16.msra.mxu1 %v1497_v17  ;;  %v83_v42 = vld [vmem:[%s2464_s26 + $0x48] sm:$0xff]  ;;  %v1509_v43 = vpack.c.bf16 %v115_v38, %v114_v37  ;;  %v101_v45 = vld [vmem:[%s2464_s26 + $0xd8] sm:$0xff]  ;;  %v116_v46 = vld [vmem:[%s2464_s26 + $0x150] sm:$0xff] }
  0x13   :  { %1502 = vmatprep.subr.bf16.mxu1 %v1501_v25  ;;  %v117_v47 = vld [vmem:[%s2464_s26 + $0x158] sm:$0xff]  ;;  %v1948_v48 = vld [vmem:[%s2465_s2 + $0x8] sm:$0xff]  ;;  %v1479_v49 = vpack.c.bf16 %v83_v42, %v82_v41  ;;  %v1954_v50 = vld [vmem:[%s2465_s2 + $0x10] sm:$0xff]  ;;  %v1481_v51 = vpack.c.bf16 %v101_v45, %v100_v44 }
  0x14   :  { %1472 = vmatpush3.bf16.msra.mxu0 %v1471_v30  ;;  %193 = vmatprep.mubr.f32.mxu0 %v1948_v48  ;;  %v84_v52 = vld [vmem:[%s2464_s26 + $0x50] sm:$0xff]  ;;  %v85_v53 = vld [vmem:[%s2464_s26 + $0x58] sm:$0xff]  ;;  %v1513_v54 = vpack.c.bf16 %v117_v47, %v116_v46  ;;  %v102_v55 = vld [vmem:[%s2464_s26 + $0xe0] sm:$0xff] }
  0x15   :  { %1474 = vmatprep.subr.bf16.mxu0 %v1473_v31  ;;  %v103_v56 = vld [vmem:[%s2464_s26 + $0xe8] sm:$0xff]  ;;  %1283 = vmatprep.mubr.f32.mxu1 %v1954_v50  ;;  %v118_v57 = vld [vmem:[%s2464_s26 + $0x160] sm:$0xff]  ;;  %v1483_v59 = vpack.c.bf16 %v85_v53, %v84_v52  ;;  %v104_v0 = vld [vmem:[%s2464_s26 + $0xf0] sm:$0xff] }
  0x16   :  { %1504 = vmatpush3.bf16.msra.mxu1 %v1501_v25  ;;  %v119_v58 = vld [vmem:[%s2464_s26 + $0x168] sm:$0xff]  ;;  %v1485_v60 = vpack.c.bf16 %v103_v56, %v102_v55  ;;  %v86_v61 = vld [vmem:[%s2464_s26 + $0x60] sm:$0xff]  ;;  %v105_v1 = vld [vmem:[%s2464_s26 + $0xf8] sm:$0xff] }
  0x17   :  { %1506 = vmatprep.subr.bf16.mxu1 %v1505_v34  ;;  %v87_v62 = vld [vmem:[%s2464_s26 + $0x68] sm:$0xff]  ;;  %v1517_v63 = vpack.c.bf16 %v119_v58, %v118_v57  ;;  %v120_v2 = vld [vmem:[%s2464_s26 + $0x170] sm:$0xff]  ;;  %v121_v3 = vld [vmem:[%s2464_s26 + $0x178] sm:$0xff]  ;;  %v1489_v5 = vpack.c.bf16 %v105_v1, %v104_v0 }
  0x18   :  { %1476 = vmatpush3.bf16.msra.mxu0 %v1475_v39  ;;  %v1487_v4 = vpack.c.bf16 %v87_v62, %v86_v61  ;;  %v88_v6 = vld [vmem:[%s2464_s26 + $0x70] sm:$0xff]  ;;  %v89_v7 = vld [vmem:[%s2464_s26 + $0x78] sm:$0xff]  ;;  %v1521_v8 = vpack.c.bf16 %v121_v3, %v120_v2  ;;  %v2002_v10 = vld [vmem:[%s2465_s2] sm:$0xff] }
  0x19   :  { %1478 = vmatprep.subr.bf16.mxu0 %v1477_v40  ;;  %v1491_v9 = vpack.c.bf16 %v89_v7, %v88_v6  ;;  %v2007_v11 = vld [vmem:[%s2465_s2 + $0x20] sm:$0xff]  ;;  %v2012_v12 = vld [vmem:[%s2465_s2 + $0x28] sm:$0xff]  ;;  %v2020_v13 = vld [vmem:[%s2465_s2 + $0x18] sm:$0xff] }
  0x1a   :  { %1508 = vmatpush3.bf16.msra.mxu1 %v1505_v34  ;;  %v1053_v17 = vld [vmem:[%s2466_s25] ss:$0 sm:$0xff]  ;;  %v323_v28 = vld [vmem:[%s2467_s5 + $0x8] sm:$0xff]  ;;  %v324_v29 = vld [vmem:[%s2467_s5 + $0x10] sm:$0xff] }
  0x1b   :  { %1510 = vmatprep.subr.bf16.mxu1 %v1509_v43  ;;  %v322_v27 = vld [vmem:[%s2467_s5] sm:$0xff]  ;;  %v325_v31 = vld [vmem:[%s2467_s5 + $0x18] sm:$0xff]  ;;  %v327_v42 = vld [vmem:[%s2467_s5 + $0x28] sm:$0xff] }
  0x1c   :  { %1480 = vmatpush3.bf16.msra.mxu0 %v1479_v49  ;;  %v1525_v30 = vpack.c.bf16 %v323_v28, %v322_v27  ;;  %v1529_v32 = vpack.c.bf16 %v325_v31, %v324_v29  ;;  %v326_v41 = vld [vmem:[%s2467_s5 + $0x20] sm:$0xff]  ;;  %v328_v44 = vld [vmem:[%s2467_s5 + $0x30] sm:$0xff]  ;;  %v329_v45 = vld [vmem:[%s2467_s5 + $0x38] sm:$0xff] }
  0x1d   :  { %1482 = vmatprep.subr.bf16.mxu0 %v1481_v51  ;;  %v1537_v46 = vpack.c.bf16 %v329_v45, %v328_v44  ;;  %v330_v47 = vld [vmem:[%s2467_s5 + $0x40] sm:$0xff]  ;;  %v331_v49 = vld [vmem:[%s2467_s5 + $0x48] sm:$0xff]  ;;  %v332_v51 = vld [vmem:[%s2467_s5 + $0x50] sm:$0xff] }
  0x1e   :  { %1512 = vmatpush3.bf16.msra.mxu1 %v1509_v43  ;;  %v1533_v43 = vpack.c.bf16 %v327_v42, %v326_v41  ;;  %v1541_v52 = vpack.c.bf16 %v331_v49, %v330_v47  ;;  %v333_v53 = vld [vmem:[%s2467_s5 + $0x58] sm:$0xff]  ;;  %v334_v55 = vld [vmem:[%s2467_s5 + $0x60] sm:$0xff]  ;;  %v335_v56 = vld [vmem:[%s2467_s5 + $0x68] sm:$0xff] }
  0x1f   :  { %1514 = vmatprep.subr.bf16.mxu1 %v1513_v54  ;;  %v1549_v57 = vpack.c.bf16 %v335_v56, %v334_v55  ;;  %v336_v58 = vld [vmem:[%s2467_s5 + $0x70] sm:$0xff]  ;;  %v1055_v6 = vld [vmem:[%s2469_s4] ss:$0 sm:$0xff]  ;;  %v465_v27 = vld [vmem:[%s2440_s9 + $0x18] sm:$0xff] }
  0x20   :  { %1484 = vmatpush3.bf16.msra.mxu0 %v1483_v59  ;;  %v337_v59 = vld [vmem:[%s2467_s5 + $0x78] sm:$0xff]  ;;  %v471_v44 = vld [vmem:[%s2440_s9 + $0x48] sm:$0xff]  ;;  %v472_v45 = vld [vmem:[%s2440_s9 + $0x50] sm:$0xff] }
  0x21   :  { %1486 = vmatprep.subr.bf16.mxu0 %v1485_v60  ;;  %v1553_v60 = vpack.c.bf16 %v337_v59, %v336_v58  ;;  %v469_v41 = vld [vmem:[%s2440_s9 + $0x38] sm:$0xff]  ;;  %v576_v49 = vld [vmem:[%s2441_s11 + $0x80] sm:$0xff]  ;;  %v475_v55 = vld [vmem:[%s2440_s9 + $0x68] sm:$0xff] }
  0x22   :  { %1516 = vmatpush3.bf16.msra.mxu1 %v1513_v54  ;;  %v1545_v54 = vpack.c.bf16 %v333_v53, %v332_v51  ;;  %v473_v47 = vld [vmem:[%s2440_s9 + $0x58] sm:$0xff]  ;;  %v577_v51 = vld [vmem:[%s2441_s11 + $0x88] sm:$0xff]  ;;  %v560_v56 = vld [vmem:[%s2441_s11] sm:$0xff] }
  0x23   :  { %1518 = vmatprep.subr.bf16.mxu1 %v1517_v63  ;;  %v1589_v53 = vpack.c.bf16 %v577_v51, %v576_v49  ;;  %v578_v58 = vld [vmem:[%s2441_s11 + $0x90] sm:$0xff]  ;;  %v579_v59 = vld [vmem:[%s2441_s11 + $0x98] sm:$0xff] }
  0x24   :  { %1488 = vmatpush3.bf16.msra.mxu0 %v1487_v4  ;;  %v1054_v4 = vld [vmem:[%s2468_s30] ss:$0 sm:$0xff] }
  0x25   :  { %1490 = vmatprep.subr.bf16.mxu0 %v1489_v5 }
  0x26   :  { %1520 = vmatpush3.bf16.msra.mxu1 %v1517_v63 }
  0x27   :  { %1522 = vmatprep.subr.bf16.mxu1 %v1521_v8 }
  0x28   :  { %1492 = vmatpush3.bf16.msra.mxu0 %v1491_v9 }
  0x29   :  { %1526 = vmatprep.subr.bf16.mxu0 %v1525_v30 }
  0x2a   :  { %1524 = vmatpush3.bf16.msra.mxu1 %v1521_v8 }
  0x2b   :  { %194 = vmatmul.mubr.f32.vlgmr.msra.gmra.mrb[0].mxu0 %v2002_v10 }
  0x2c   :  { %198 = vmatprep.mubr.f32.mxu0 %v2007_v11  ;;  %1528 = vmatpush3.bf16.msra.mxu0 %v1525_v30 }
  0x2d   :  { %1284 = vmatmul.mubr.f32.vlgmr.msra.gmra.mrb[0].mxu1 %v2012_v12  ;;  %1530 = vmatprep.subr.bf16.mxu0 %v1529_v32 }
  0x2f   :  { %199 = vmatmul.mubr.f32.gmra.mrb[2].mxu0 %v2020_v13 }
  0x30   :  { %1532 = vmatpush3.bf16.msra.mxu0 %v1529_v32 }
  0x31   :  { %1534 = vmatprep.subr.bf16.mxu0 %v1533_v43 }
  0x34   :  { %1536 = vmatpush3.bf16.msra.mxu0 %v1533_v43  ;;  %v470_v43 = vld [vmem:[%s2440_s9 + $0x40] sm:$0xff] }
  0x35   :  { %1538 = vmatprep.subr.bf16.mxu0 %v1537_v46 }
  0x38   :  { %1540 = vmatpush3.bf16.msra.mxu0 %v1537_v46  ;;  %v1573_v46 = vpack.c.bf16 %v471_v44, %v470_v43  ;;  %v590_v43 = vld [vmem:[%s2441_s11 + $0xf0] sm:$0xff]  ;;  %v591_v44 = vld [vmem:[%s2441_s11 + $0xf8] sm:$0xff] }
  0x39   :  { %1542 = vmatprep.subr.bf16.mxu0 %v1541_v52 }
  0x3c   :  { %1544 = vmatpush3.bf16.msra.mxu0 %v1541_v52  ;;  %v1577_v52 = vpack.c.bf16 %v473_v47, %v472_v45  ;;  %v1617_v45 = vpack.c.bf16 %v591_v44, %v590_v43  ;;  %v575_v47 = vld [vmem:[%s2441_s11 + $0x78] sm:$0xff]  ;;  %v808_v43 = vld [vmem:[%s2447_s15 + $0x8] sm:$0xff]  ;;  %v809_v44 = vld [vmem:[%s2447_s15 + $0x10] sm:$0xff] }
  0x3d   :  { %1546 = vmatprep.subr.bf16.mxu0 %v1545_v54 }
  0x40   :  { %1548 = vmatpush3.bf16.msra.mxu0 %v1545_v54  ;;  %v474_v54 = vld [vmem:[%s2440_s9 + $0x60] sm:$0xff] }
  0x41   :  { %1550 = vmatprep.subr.bf16.mxu0 %v1549_v57 }
  0x44   :  { %1552 = vmatpush3.bf16.msra.mxu0 %v1549_v57  ;;  %v561_v57 = vld [vmem:[%s2441_s11 + $0x8] sm:$0xff] }
  0x45   :  { %1554 = vmatprep.subr.bf16.mxu0 %v1553_v60 }
  0x48   :  { %1556 = vmatpush3.bf16.msra.mxu0 %v1553_v60  ;;  %v1591_v60 = vpack.c.bf16 %v561_v57, %v560_v56 }
  0x49   :  { %1590 = vmatprep.subr.bf16.mxu0 %v1589_v53 }
  0xfe   :  { %v1099_v14 = vpop.f32.mrb[0].mxu0 }
  0xff   :  { %v1100_v15 = vpop.f32.mrb[1].mxu0 }
 0x100   :  { %v1285_v16 = vpop.f32.mrb[0].mxu1  ;;  %v1101_v18 = vadd.f32 %v1100_v15, %v1099_v14 }
 0x101   :  { %v270_v19 = vpop.f32.mrb[1].mxu1 }
 0x102   :  { %v1102_v20 = vpop.f32.mrb[2].mxu0  ;;  %v196_v21 = vadd.f32 %v1101_v18, %v1053_v17 }
 0x103   :  { %v1103_v22 = vpop.f32.mrb[3].mxu0 }
 0x104   :  { %v271_v23 = vadd.f32 %v270_v19, %v196_v21  ;;  %v1104_v24 = vadd.f32 %v1103_v22, %v1102_v20  ;;  %v1056_v19 = vld [vmem:[%s2439_s6] ss:$0 sm:$0xff] }
 0x106   :  { %v201_v25 = vadd.f32 %v1104_v24, %v1053_v17  ;;  %281 = vadd.xlane.f32.xlu0 %v271_v23  ;;  %v462_v24 = vld [vmem:[%s2440_s9] sm:$0xff] }
 0x108   :  { %v276_v26 = vadd.f32 %v1285_v16, %v201_v25  ;;  %v463_v25 = vld [vmem:[%s2440_s9 + $0x8] sm:$0xff] }
 0x10a   :  { %283 = vadd.xlane.f32.xlu0 %v276_v26 }
 0x193   :  { %v282_v33 = vpop.xlane.xlu0 %281 }
 0x194   :  { %v286_v34 = vmul.f32 0.0078125, %v282_v33 }
 0x196   :  { %v288_v35 = vsub.f32 %v271_v23, %v286_v34 }
 0x197   :  { %v284_v36 = vpop.xlane.xlu0 %283 }
 0x198   :  { %v287_v37 = vmul.f32 0.0078125, %v284_v36  ;;  %v290_v38 = vmul.f32 %v288_v35, %v288_v35 }
 0x19a   :  { %v289_v39 = vsub.f32 %v276_v26, %v287_v37  ;;  %292 = vadd.xlane.f32.xlu1 %v290_v38  ;;  %v1557_v26 = vpack.c.bf16 %v463_v25, %v462_v24  ;;  %v466_v37 = vld [vmem:[%s2440_s9 + $0x20] sm:$0xff]  ;;  %v467_v38 = vld [vmem:[%s2440_s9 + $0x28] sm:$0xff] }
 0x19b   :  { %v584_v24 = vld [vmem:[%s2441_s11 + $0xc0] sm:$0xff]  ;;  %v585_v25 = vld [vmem:[%s2441_s11 + $0xc8] sm:$0xff] }
 0x19c   :  { %v291_v40 = vmul.f32 %v289_v39, %v289_v39  ;;  %1558 = vmatprep.subr.bf16.mxu1 %v1557_v26 }
 0x19d   :  { %1560 = vmatpush3.bf16.msra.mxu1 %v1557_v26  ;;  %v568_v26 = vld [vmem:[%s2441_s11 + $0x40] sm:$0xff] }
 0x19e   :  { %294 = vadd.xlane.f32.xlu1 %v291_v40  ;;  %v468_v40 = vld [vmem:[%s2440_s9 + $0x30] sm:$0xff] }
 0x19f   :  { %v1569_v42 = vpack.c.bf16 %v469_v41, %v468_v40  ;;  %v572_v40 = vld [vmem:[%s2441_s11 + $0x60] sm:$0xff]  ;;  %v573_v41 = vld [vmem:[%s2441_s11 + $0x68] sm:$0xff] }
 0x227   :  { %v293_v61 = vpop.xlane.xlu1 %292 }
 0x228   :  { %v296_v62 = vmul.f32 0.0078125, %v293_v61  ;;  %v1593_v61 = vpack.c.bf16 %v579_v59, %v578_v58  ;;  %v1057_v58 = vld [vmem:[%s2442_s7] ss:$0 sm:$0xff] }
 0x22a   :  { %v298_v63 = vadd.f32 1e-05, %v296_v62  ;;  %v562_v62 = vld [vmem:[%s2441_s11 + $0x10] sm:$0xff] }
 0x22b   :  { %v295_v0 = vpop.xlane.xlu1 %294 }
 0x22c   :  { %1717 = vrsqrt.f32 %v298_v63  ;;  %v297_v1 = vmul.f32 0.0078125, %v295_v0  ;;  %v1581_v63 = vpack.c.bf16 %v475_v55, %v474_v54  ;;  %v563_v0 = vld [vmem:[%s2441_s11 + $0x18] sm:$0xff] }
 0x22e   :  { %v299_v2 = vadd.f32 1e-05, %v297_v1  ;;  %v580_v1 = vld [vmem:[%s2441_s11 + $0xa0] sm:$0xff] }
 0x230   :  { %1719 = vrsqrt.f32 %v299_v2  ;;  %v581_v2 = vld [vmem:[%s2441_s11 + $0xa8] sm:$0xff] }
 0x236   :  { %v1718_v3 = vpop.eup %1717 }
 0x237   :  { %v302_v5 = vmul.f32 %v1718_v3, %v288_v35  ;;  %v476_v3 = vld [vmem:[%s2440_s9 + $0x70] sm:$0xff] }
 0x239   :  { %v310_v7 = vmul.f32 %v1054_v4, %v302_v5  ;;  %v1595_v5 = vpack.c.bf16 %v563_v0, %v562_v62  ;;  %v594_v0 = vld [vmem:[%s2441_s11 + $0x110] sm:$0xff] }
 0x23a   :  { %v1720_v8 = vpop.eup %1719 }
 0x23b   :  { %v303_v9 = vmul.f32 %v1720_v8, %v289_v39  ;;  %v318_v14 = vadd.f32 %v1055_v6, %v310_v7  ;;  %v1565_v39 = vpack.c.bf16 %v467_v38, %v466_v37  ;;  %v564_v8 = vld [vmem:[%s2441_s11 + $0x20] sm:$0xff]  ;;  %v589_v38 = vld [vmem:[%s2441_s11 + $0xe8] sm:$0xff] }
 0x23c   :  { %v588_v37 = vld [vmem:[%s2441_s11 + $0xe0] sm:$0xff] }
 0x23d   :  { %v311_v15 = vmul.f32 %v1054_v4, %v303_v9  ;;  %v320_v16 = vmax.f32 %v318_v14, 0.0  ;;  %v477_v4 = vld [vmem:[%s2440_s9 + $0x78] sm:$0xff]  ;;  %v565_v9 = vld [vmem:[%s2441_s11 + $0x28] sm:$0xff]  ;;  %v592_v14 = vld [vmem:[%s2441_s11 + $0x100] sm:$0xff] }
 0x23e   :  { %v1585_v7 = vpack.c.bf16 %v477_v4, %v476_v3  ;;  %v597_v4 = vld [vmem:[%s2441_s11 + $0x128] sm:$0xff] }
 0x23f   :  { %v319_v17 = vadd.f32 %v1055_v6, %v311_v15  ;;  %1318 = vmatprep.mubr.f32.mxu0 %v320_v16  ;;  %v1597_v6 = vpack.c.bf16 %v581_v2, %v580_v1  ;;  %v1599_v15 = vpack.c.bf16 %v565_v9, %v564_v8  ;;  %v593_v16 = vld [vmem:[%s2441_s11 + $0x108] sm:$0xff]  ;;  %v595_v1 = vld [vmem:[%s2441_s11 + $0x118] sm:$0xff]  ;;  %v600_v9 = vld [vmem:[%s2441_s11 + $0x140] sm:$0xff] }
 0x240   :  { %v1625_v3 = vpack.c.bf16 %v595_v1, %v594_v0  ;;  %v818_v1 = vld [vmem:[%s2447_s15 + $0x58] sm:$0xff] }
 0x241   :  { %v321_v18 = vmax.f32 %v319_v17, 0.0  ;;  %v2182_v17 = vpack.c.bf16 %v593_v16, %v592_v14  ;;  %v603_v16 = vld [vmem:[%s2441_s11 + $0x158] sm:$0xff] }
 0x243   :  { %1319 = vmatmul.mubr.f32.vlgmr.msra.gmra.mrb[4].mxu0 %v321_v18  ;;  %v582_v18 = vld [vmem:[%s2441_s11 + $0xb0] sm:$0xff] }
 0x244   :  { %679 = vmatprep.mubr.f32.mxu0 %v1948_v48  ;;  %v464_v48 = vld [vmem:[%s2440_s9 + $0x10] sm:$0xff]  ;;  %1592 = vmatpush3.bf16.msra.mxu0 %v1591_v60 }
 0x245   :  { %v1561_v28 = vpack.c.bf16 %v465_v27, %v464_v48  ;;  %1594 = vmatprep.subr.bf16.mxu0 %v1593_v61  ;;  %v1605_v48 = vpack.c.bf16 %v585_v25, %v584_v24  ;;  %v569_v27 = vld [vmem:[%s2441_s11 + $0x48] sm:$0xff] }
 0x247   :  { %1562 = vmatprep.subr.bf16.mxu1 %v1561_v28 }
 0x248   :  { %1564 = vmatpush3.bf16.msra.mxu1 %v1561_v28  ;;  %1596 = vmatpush3.bf16.msra.mxu0 %v1595_v5  ;;  %v1607_v28 = vpack.c.bf16 %v569_v27, %v568_v26 }
 0x249   :  { %1566 = vmatprep.subr.bf16.mxu1 %v1565_v39  ;;  %1598 = vmatprep.subr.bf16.mxu0 %v1597_v6  ;;  %v598_v6 = vld [vmem:[%s2441_s11 + $0x130] sm:$0xff] }
 0x24c   :  { %1568 = vmatpush3.bf16.msra.mxu1 %v1565_v39  ;;  %1600 = vmatpush3.bf16.msra.mxu0 %v1599_v15  ;;  %v1613_v39 = vpack.c.bf16 %v589_v38, %v588_v37  ;;  %v602_v15 = vld [vmem:[%s2441_s11 + $0x150] sm:$0xff] }
 0x24d   :  { %1570 = vmatprep.subr.bf16.mxu1 %v1569_v42 }
 0x250   :  { %1572 = vmatpush3.bf16.msra.mxu1 %v1569_v42  ;;  %v1615_v42 = vpack.c.bf16 %v573_v41, %v572_v40 }
 0x251   :  { %1574 = vmatprep.subr.bf16.mxu1 %v1573_v46 }
 0x254   :  { %1576 = vmatpush3.bf16.msra.mxu1 %v1573_v46  ;;  %v574_v46 = vld [vmem:[%s2441_s11 + $0x70] sm:$0xff] }
 0x255   :  { %1578 = vmatprep.subr.bf16.mxu1 %v1577_v52  ;;  %v1619_v49 = vpack.c.bf16 %v575_v47, %v574_v46  ;;  %v810_v46 = vld [vmem:[%s2447_s15 + $0x18] sm:$0xff] }
 0x256   :  { %v1657_v47 = vpack.c.bf16 %v810_v46, %v809_v44 }
 0x258   :  { %1580 = vmatpush3.bf16.msra.mxu1 %v1577_v52 }
 0x259   :  { %1582 = vmatprep.subr.bf16.mxu1 %v1581_v63 }
 0x25c   :  { %1584 = vmatpush3.bf16.msra.mxu1 %v1581_v63 }
 0x25d   :  { %1586 = vmatprep.subr.bf16.mxu1 %v1585_v7 }
 0x260   :  { %1588 = vmatpush3.bf16.msra.mxu1 %v1585_v7  ;;  %v599_v7 = vld [vmem:[%s2441_s11 + $0x138] sm:$0xff] }
 0x261   :  { %1622 = vmatprep.subr.bf16.mxu1 %v2182_v17  ;;  %v1633_v8 = vpack.c.bf16 %v599_v7, %v598_v6 }
 0x316   :  { %v1320_v20 = vpop.f32.mrb[4].mxu0 }
 0x317   :  { %v417_v21 = vadd.f32 %v1320_v20, %v1056_v19  ;;  %v411_v22 = vpop.f32.mrb[5].mxu0 }
 0x318   :  { %v412_v23 = vadd.f32 %v1056_v19, %v411_v22  ;;  %v583_v19 = vld [vmem:[%s2441_s11 + $0xb8] sm:$0xff] }
 0x319   :  { %424 = vadd.xlane.f32.xlu1 %v417_v21  ;;  %v1601_v20 = vpack.c.bf16 %v583_v19, %v582_v18  ;;  %v567_v22 = vld [vmem:[%s2441_s11 + $0x38] sm:$0xff]  ;;  %v604_v18 = vld [vmem:[%s2441_s11 + $0x160] sm:$0xff]  ;;  %v605_v19 = vld [vmem:[%s2441_s11 + $0x168] sm:$0xff] }
 0x31a   :  { %422 = vadd.xlane.f32.xlu0 %v412_v23 }
 0x31b   :  { %1602 = vmatprep.subr.bf16.mxu0 %v1601_v20  ;;  %v1645_v20 = vpack.c.bf16 %v605_v19, %v604_v18 }
 0x3a6   :  { %v425_v29 = vpop.xlane.xlu1 %424 }
 0x3a7   :  { %v427_v30 = vmul.f32 0.0078125, %v425_v29  ;;  %v423_v31 = vpop.xlane.xlu0 %422  ;;  %v586_v29 = vld [vmem:[%s2441_s11 + $0xd0] sm:$0xff] }
 0x3a8   :  { %v426_v32 = vmul.f32 0.0078125, %v423_v31 }
 0x3a9   :  { %v2096_v33 = vsub.f32 %v417_v21, %v427_v30  ;;  %v566_v21 = vld [vmem:[%s2441_s11 + $0x30] sm:$0xff]  ;;  %v587_v30 = vld [vmem:[%s2441_s11 + $0xd8] sm:$0xff] }
 0x3aa   :  { %v2098_v34 = vsub.f32 %v412_v23, %v426_v32  ;;  %v1603_v23 = vpack.c.bf16 %v567_v22, %v566_v21  ;;  %v1609_v31 = vpack.c.bf16 %v587_v30, %v586_v29  ;;  %v570_v32 = vld [vmem:[%s2441_s11 + $0x50] sm:$0xff]  ;;  %v607_v22 = vld [vmem:[%s2441_s11 + $0x178] sm:$0xff]  ;;  %v1059_v29 = vld [vmem:[%s2444_s10] ss:$0 sm:$0xff] }
 0x3ab   :  { %v431_v35 = vmul.f32 %v2096_v33, %v2096_v33  ;;  %v606_v21 = vld [vmem:[%s2441_s11 + $0x170] sm:$0xff] }
 0x3ac   :  { %v430_v36 = vmul.f32 %v2098_v34, %v2098_v34  ;;  %1604 = vmatpush3.bf16.msra.mxu0 %v1603_v23  ;;  %v1649_v23 = vpack.c.bf16 %v607_v22, %v606_v21 }
 0x3ad   :  { %434 = vadd.xlane.f32.xlu1 %v431_v35  ;;  %1606 = vmatprep.subr.bf16.mxu0 %v1605_v48  ;;  %v571_v35 = vld [vmem:[%s2441_s11 + $0x58] sm:$0xff] }
 0x3ae   :  { %432 = vadd.xlane.f32.xlu0 %v430_v36  ;;  %v1611_v36 = vpack.c.bf16 %v571_v35, %v570_v32 }
 0x3b0   :  { %1608 = vmatpush3.bf16.msra.mxu0 %v1607_v28 }
 0x3b1   :  { %1610 = vmatprep.subr.bf16.mxu0 %v1609_v31 }
 0x3b4   :  { %1612 = vmatpush3.bf16.msra.mxu0 %v1611_v36 }
 0x3b5   :  { %1614 = vmatprep.subr.bf16.mxu0 %v1613_v39 }
 0x3b8   :  { %1616 = vmatpush3.bf16.msra.mxu0 %v1615_v42  ;;  %v807_v42 = vld [vmem:[%s2447_s15] sm:$0xff] }
 0x3b9   :  { %1618 = vmatprep.subr.bf16.mxu0 %v1617_v45  ;;  %v1653_v45 = vpack.c.bf16 %v808_v43, %v807_v42 }
 0x3bc   :  { %1620 = vmatpush3.bf16.msra.mxu0 %v1619_v49 }
 0x3bd   :  { %1654 = vmatprep.subr.bf16.mxu0 %v1653_v45 }
 0x3bf   :  { %680 = vmatmul.mubr.f32.vlgmr.msra.gmra.mrb[6].mxu0 %v2002_v10 }
 0x3c0   :  { %684 = vmatprep.mubr.f32.mxu0 %v2007_v11  ;;  %v1058_v11 = vld [vmem:[%s2443_s8] ss:$0 sm:$0xff]  ;;  %1656 = vmatpush3.bf16.msra.mxu0 %v1653_v45 }
 0x3c1   :  { %1658 = vmatprep.subr.bf16.mxu0 %v1657_v47 }
 0x3c3   :  { %685 = vmatmul.mubr.f32.gmra.mrb[8].mxu0 %v2020_v13 }
 0x3c4   :  { %1660 = vmatpush3.bf16.msra.mxu0 %v1657_v47  ;;  %v951_v47 = vld [vmem:[%s2451_s19 + $0x20] sm:$0xff] }
 0x43a   :  { %v435_v51 = vpop.xlane.xlu1 %434 }
 0x43b   :  { %v437_v52 = vmul.f32 0.0078125, %v435_v51  ;;  %v433_v53 = vpop.xlane.xlu0 %432 }
 0x43c   :  { %v436_v54 = vmul.f32 0.0078125, %v433_v53 }
 0x43d   :  { %v439_v55 = vadd.f32 1e-05, %v437_v52 }
 0x43e   :  { %v438_v56 = vadd.f32 1e-05, %v436_v54 }
 0x43f   :  { %1721 = vrsqrt.f32 %v439_v55 }
 0x440   :  { %1723 = vrsqrt.f32 %v438_v56 }
 0x449   :  { %v1722_v57 = vpop.eup %1721 }
 0x44a   :  { %v1724_v59 = vpop.eup %1723  ;;  %v443_v10 = vmul.f32 %v1722_v57, %v2096_v33 }
 0x44b   :  { %v442_v13 = vmul.f32 %v1724_v59, %v2098_v34  ;;  %v596_v34 = vld [vmem:[%s2441_s11 + $0x120] sm:$0xff]  ;;  %v812_v59 = vld [vmem:[%s2447_s15 + $0x28] sm:$0xff] }
 0x44c   :  { %v451_v60 = vmul.f32 %v1057_v58, %v443_v10  ;;  %v1629_v5 = vpack.c.bf16 %v597_v4, %v596_v34  ;;  %v821_v4 = vld [vmem:[%s2447_s15 + $0x70] sm:$0xff] }
 0x44d   :  { %v450_v61 = vmul.f32 %v1057_v58, %v442_v13  ;;  %v811_v58 = vld [vmem:[%s2447_s15 + $0x20] sm:$0xff]  ;;  %v814_v13 = vld [vmem:[%s2447_s15 + $0x38] sm:$0xff] }
 0x44e   :  { %v459_v62 = vadd.f32 %v1058_v11, %v451_v60  ;;  %v1661_v10 = vpack.c.bf16 %v812_v59, %v811_v58  ;;  %v958_v59 = vld [vmem:[%s2451_s19 + $0x58] sm:$0xff] }
 0x44f   :  { %v458_v63 = vadd.f32 %v1058_v11, %v450_v61  ;;  %v813_v11 = vld [vmem:[%s2447_s15 + $0x30] sm:$0xff]  ;;  %v815_v61 = vld [vmem:[%s2447_s15 + $0x40] sm:$0xff] }
 0x450   :  { %v461_v33 = vmax.f32 %v459_v62, 0.0  ;;  %1662 = vmatprep.subr.bf16.mxu0 %v1661_v10  ;;  %v1665_v60 = vpack.c.bf16 %v814_v13, %v813_v11  ;;  %v816_v62 = vld [vmem:[%s2447_s15 + $0x48] sm:$0xff]  ;;  %v959_v11 = vld [vmem:[%s2451_s19 + $0x60] sm:$0xff] }
 0x451   :  { %v460_v2 = vmax.f32 %v458_v63, 0.0  ;;  %1664 = vmatpush3.bf16.msra.mxu0 %v1661_v10  ;;  %v817_v63 = vld [vmem:[%s2447_s15 + $0x50] sm:$0xff]  ;;  %v1669_v0 = vpack.c.bf16 %v816_v62, %v815_v61  ;;  %v960_v13 = vld [vmem:[%s2451_s19 + $0x68] sm:$0xff]  ;;  %v962_v62 = vld [vmem:[%s2451_s19 + $0x78] sm:$0xff] }
 0x452   :  { %1666 = vmatprep.subr.bf16.mxu0 %v1665_v60  ;;  %v961_v61 = vld [vmem:[%s2451_s19 + $0x70] sm:$0xff] }
 0x453   :  { %1353 = vmatprep.mubr.f32.mxu1 %v460_v2  ;;  %v1673_v2 = vpack.c.bf16 %v818_v1, %v817_v63  ;;  %v1713_v63 = vpack.c.bf16 %v962_v62, %v961_v61 }
 0x454   :  { %1354 = vmatmul.mubr.f32.vlgmr.msra.gmra.mrb[2].mxu1 %v461_v33  ;;  %v819_v33 = vld [vmem:[%s2447_s15 + $0x60] sm:$0xff] }
 0x455   :  { %1624 = vmatpush3.bf16.msra.mxu1 %v2182_v17  ;;  %1388 = vmatprep.mubr.f32.mxu1 %v1954_v50  ;;  %v601_v50 = vld [vmem:[%s2441_s11 + $0x148] sm:$0xff]  ;;  %v1641_v17 = vpack.c.bf16 %v603_v16, %v602_v15 }
 0x456   :  { %1626 = vmatprep.subr.bf16.mxu1 %v1625_v3  ;;  %v1637_v14 = vpack.c.bf16 %v601_v50, %v600_v9  ;;  %1668 = vmatpush3.bf16.msra.mxu0 %v1665_v60  ;;  %v1709_v60 = vpack.c.bf16 %v960_v13, %v959_v11 }
 0x457   :  { %1670 = vmatprep.subr.bf16.mxu0 %v1669_v0 }
 0x459   :  { %1628 = vmatpush3.bf16.msra.mxu1 %v1625_v3  ;;  %v820_v3 = vld [vmem:[%s2447_s15 + $0x68] sm:$0xff] }
 0x45a   :  { %1630 = vmatprep.subr.bf16.mxu1 %v1629_v5  ;;  %1672 = vmatpush3.bf16.msra.mxu0 %v1669_v0  ;;  %v1677_v34 = vpack.c.bf16 %v820_v3, %v819_v33 }
 0x45b   :  { %1674 = vmatprep.subr.bf16.mxu0 %v1673_v2 }
 0x45d   :  { %1632 = vmatpush3.bf16.msra.mxu1 %v1629_v5  ;;  %v822_v5 = vld [vmem:[%s2447_s15 + $0x78] sm:$0xff] }
 0x45e   :  { %1634 = vmatprep.subr.bf16.mxu1 %v1633_v8  ;;  %1676 = vmatpush3.bf16.msra.mxu0 %v1673_v2  ;;  %v1681_v6 = vpack.c.bf16 %v822_v5, %v821_v4  ;;  %v1064_v5 = vld [vmem:[%s2452_s17] ss:$0 sm:$0xff] }
 0x45f   :  { %1678 = vmatprep.subr.bf16.mxu0 %v1677_v34 }
 0x461   :  { %1636 = vmatpush3.bf16.msra.mxu1 %v1633_v8 }
 0x462   :  { %1638 = vmatprep.subr.bf16.mxu1 %v1637_v14  ;;  %1680 = vmatpush3.bf16.msra.mxu0 %v1677_v34 }
 0x463   :  { %1682 = vmatprep.subr.bf16.mxu0 %v1681_v6 }
 0x465   :  { %1640 = vmatpush3.bf16.msra.mxu1 %v1637_v14 }
 0x466   :  { %1642 = vmatprep.subr.bf16.mxu1 %v1641_v17  ;;  %1684 = vmatpush3.bf16.msra.mxu0 %v1681_v6 }
 0x469   :  { %1644 = vmatpush3.bf16.msra.mxu1 %v1641_v17  ;;  %v1061_v17 = vld [vmem:[%s2448_s13] ss:$0 sm:$0xff] }
 0x46a   :  { %1646 = vmatprep.subr.bf16.mxu1 %v1645_v20 }
 0x46d   :  { %1648 = vmatpush3.bf16.msra.mxu1 %v1645_v20  ;;  %v1062_v20 = vld [vmem:[%s2449_s14] ss:$0 sm:$0xff] }
 0x46e   :  { %1650 = vmatprep.subr.bf16.mxu1 %v1649_v23 }
 0x471   :  { %1652 = vmatpush3.bf16.msra.mxu1 %v1649_v23 }
 0x474   :  { %1389 = vmatmul.mubr.f32.vlgmr.msra.gmra.mrb[4].mxu1 %v2012_v12  ;;  %v1060_v12 = vld [vmem:[%s2446_s12] ss:$0 sm:$0xff] }
 0x492   :  { %v1191_v24 = vpop.f32.mrb[6].mxu0 }
 0x493   :  { %v1192_v25 = vpop.f32.mrb[7].mxu0 }
 0x494   :  { %v1193_v48 = vadd.f32 %v1192_v25, %v1191_v24 }
 0x496   :  { %v1194_v26 = vpop.f32.mrb[8].mxu0  ;;  %v682_v38 = vadd.f32 %v1193_v48, %v1060_v12 }
 0x497   :  { %v1195_v27 = vpop.f32.mrb[9].mxu0 }
 0x498   :  { %v1196_v28 = vadd.f32 %v1195_v27, %v1194_v26  ;;  %v1063_v27 = vld [vmem:[%s2450_s16] ss:$0 sm:$0xff] }
 0x49a   :  { %v687_v36 = vadd.f32 %v1196_v28, %v1060_v12  ;;  %v949_v12 = vld [vmem:[%s2451_s19 + $0x10] sm:$0xff] }
 0x527   :  { %v1355_v30 = vpop.f32.mrb[2].mxu1 }
 0x528   :  { %v557_v31 = vadd.f32 %v1355_v30, %v1059_v29  ;;  %v551_v32 = vpop.f32.mrb[3].mxu1 }
 0x529   :  { %v552_v35 = vadd.f32 %v1059_v29, %v551_v32  ;;  %v947_v32 = vld [vmem:[%s2451_s19] sm:$0xff] }
 0x52a   :  { %1046 = vst [vmem:[%s2445_s21 + $0x10] sm:$0xff] %v557_v31 }
 0x52b   :  { %1045 = vst [vmem:[%s2445_s21] sm:$0xff] %v552_v35  ;;  %v948_v35 = vld [vmem:[%s2451_s19 + $0x8] sm:$0xff] }
 0x547   :  { %v1390_v37 = vpop.f32.mrb[4].mxu1 }
 0x548   :  { %v762_v39 = vadd.f32 %v1390_v37, %v687_v36  ;;  %v756_v40 = vpop.f32.mrb[5].mxu1  ;;  %v1685_v36 = vpack.c.bf16 %v948_v35, %v947_v32  ;;  %v950_v37 = vld [vmem:[%s2451_s19 + $0x18] sm:$0xff] }
 0x549   :  { %v757_v41 = vadd.f32 %v756_v40, %v682_v38  ;;  %v1689_v38 = vpack.c.bf16 %v950_v37, %v949_v12 }
 0x54a   :  { %769 = vadd.xlane.f32.xlu1 %v762_v39  ;;  %1686 = vmatprep.subr.bf16.mxu1 %v1685_v36 }
 0x54b   :  { %767 = vadd.xlane.f32.xlu0 %v757_v41  ;;  %1688 = vmatpush3.bf16.msra.mxu1 %v1685_v36 }
 0x54c   :  { %1690 = vmatprep.subr.bf16.mxu1 %v1689_v38 }
 0x54f   :  { %1692 = vmatpush3.bf16.msra.mxu1 %v1689_v38 }
 0x5d7   :  { %v770_v49 = vpop.xlane.xlu1 %769 }
 0x5d8   :  { %v772_v51 = vmul.f32 0.0078125, %v770_v49  ;;  %v768_v52 = vpop.xlane.xlu0 %767  ;;  %v952_v49 = vld [vmem:[%s2451_s19 + $0x28] sm:$0xff] }
 0x5d9   :  { %v771_v53 = vmul.f32 0.0078125, %v768_v52  ;;  %v953_v52 = vld [vmem:[%s2451_s19 + $0x30] sm:$0xff] }
 0x5da   :  { %v774_v54 = vsub.f32 %v762_v39, %v772_v51  ;;  %v1693_v51 = vpack.c.bf16 %v952_v49, %v951_v47 }
 0x5db   :  { %v773_v55 = vsub.f32 %v757_v41, %v771_v53  ;;  %v954_v53 = vld [vmem:[%s2451_s19 + $0x38] sm:$0xff] }
 0x5dc   :  { %v776_v56 = vmul.f32 %v774_v54, %v774_v54  ;;  %1694 = vmatprep.subr.bf16.mxu1 %v1693_v51 }
 0x5dd   :  { %v775_v57 = vmul.f32 %v773_v55, %v773_v55  ;;  %1696 = vmatpush3.bf16.msra.mxu1 %v1693_v51 }
 0x5de   :  { %779 = vadd.xlane.f32.xlu1 %v776_v56  ;;  %v956_v56 = vld [vmem:[%s2451_s19 + $0x48] sm:$0xff] }
 0x5df   :  { %777 = vadd.xlane.f32.xlu0 %v775_v57  ;;  %v957_v57 = vld [vmem:[%s2451_s19 + $0x50] sm:$0xff] }
 0x5e0   :  { %v1705_v10 = vpack.c.bf16 %v958_v59, %v957_v57 }
 0x66b   :  { %v780_v7 = vpop.xlane.xlu1 %779 }
 0x66c   :  { %v782_v8 = vmul.f32 0.0078125, %v780_v7  ;;  %v778_v9 = vpop.xlane.xlu0 %777 }
 0x66d   :  { %v781_v50 = vmul.f32 0.0078125, %v778_v9 }
 0x66e   :  { %v784_v14 = vadd.f32 1e-05, %v782_v8  ;;  %v1065_v8 = vld [vmem:[%s2453_s18] ss:$0 sm:$0xff] }
 0x66f   :  { %v783_v15 = vadd.f32 1e-05, %v781_v50 }
 0x670   :  { %1725 = vrsqrt.f32 %v784_v14 }
 0x671   :  { %1727 = vrsqrt.f32 %v783_v15 }
 0x67a   :  { %v1726_v16 = vpop.eup %1725 }
 0x67b   :  { %v1728_v18 = vpop.eup %1727  ;;  %v788_v19 = vmul.f32 %v1726_v16, %v774_v54  ;;  %v1697_v54 = vpack.c.bf16 %v954_v53, %v953_v52 }
 0x67c   :  { %v787_v21 = vmul.f32 %v1728_v18, %v773_v55  ;;  %v955_v55 = vld [vmem:[%s2451_s19 + $0x40] sm:$0xff] }
 0x67d   :  { %v796_v22 = vmul.f32 %v1061_v17, %v788_v19  ;;  %1698 = vmatprep.subr.bf16.mxu1 %v1697_v54  ;;  %v1701_v58 = vpack.c.bf16 %v956_v56, %v955_v55  ;;  %v1066_v19 = vld [vmem:[%s2454_s20] ss:$0 sm:$0xff] }
 0x67e   :  { %v795_v23 = vmul.f32 %v1061_v17, %v787_v21  ;;  %1700 = vmatpush3.bf16.msra.mxu1 %v1697_v54 }
 0x67f   :  { %v804_v24 = vadd.f32 %v1062_v20, %v796_v22  ;;  %1702 = vmatprep.subr.bf16.mxu1 %v1701_v58 }
 0x680   :  { %v803_v25 = vadd.f32 %v1062_v20, %v795_v23 }
 0x681   :  { %v806_v26 = vmax.f32 %v804_v24, 0.0 }
 0x682   :  { %v805_v48 = vmax.f32 %v803_v25, 0.0  ;;  %1704 = vmatpush3.bf16.msra.mxu1 %v1701_v58 }
 0x683   :  { %1706 = vmatprep.subr.bf16.mxu1 %v1705_v10 }
 0x684   :  { %1423 = vmatprep.mubr.f32.mxu0 %v805_v48 }
 0x685   :  { %1424 = vmatmul.mubr.f32.vlgmr.msra.gmra.mrb[10].mxu0 %v806_v26 }
 0x686   :  { %1708 = vmatpush3.bf16.msra.mxu1 %v1705_v10 }
 0x687   :  { %1710 = vmatprep.subr.bf16.mxu1 %v1709_v60 }
 0x68a   :  { %1712 = vmatpush3.bf16.msra.mxu1 %v1709_v60 }
 0x68b   :  { %1714 = vmatprep.subr.bf16.mxu1 %v1713_v63 }
 0x68e   :  { %1716 = vmatpush3.bf16.msra.mxu1 %v1713_v63 }
 0x758   :  { %v1425_v28 = vpop.f32.mrb[10].mxu0 }
 0x759   :  { %v902_v29 = vadd.f32 %v1425_v28, %v1063_v27  ;;  %v896_v30 = vpop.f32.mrb[11].mxu0 }
 0x75a   :  { %v897_v31 = vadd.f32 %v1063_v27, %v896_v30 }
 0x75b   :  { %909 = vadd.xlane.f32.xlu1 %v902_v29 }
 0x75c   :  { %907 = vadd.xlane.f32.xlu0 %v897_v31 }
 0x7e8   :  { %v910_v39 = vpop.xlane.xlu1 %909 }
 0x7e9   :  { %v912_v40 = vmul.f32 0.0078125, %v910_v39  ;;  %v908_v41 = vpop.xlane.xlu0 %907 }
 0x7ea   :  { %v911_v42 = vmul.f32 0.0078125, %v908_v41 }
 0x7eb   :  { %v914_v43 = vsub.f32 %v902_v29, %v912_v40 }
 0x7ec   :  { %v913_v44 = vsub.f32 %v897_v31, %v911_v42 }
 0x7ed   :  { %v916_v45 = vmul.f32 %v914_v43, %v914_v43 }
 0x7ee   :  { %v915_v46 = vmul.f32 %v913_v44, %v913_v44 }
 0x7ef   :  { %919 = vadd.xlane.f32.xlu1 %v916_v45 }
 0x7f0   :  { %917 = vadd.xlane.f32.xlu0 %v915_v46 }
 0x87c   :  { %v920_v0 = vpop.xlane.xlu1 %919 }
 0x87d   :  { %v922_v1 = vmul.f32 0.0078125, %v920_v0  ;;  %v918_v2 = vpop.xlane.xlu0 %917 }
 0x87e   :  { %v921_v33 = vmul.f32 0.0078125, %v918_v2 }
 0x87f   :  { %v924_v3 = vadd.f32 1e-05, %v922_v1 }
 0x880   :  { %v923_v34 = vadd.f32 1e-05, %v921_v33 }
 0x881   :  { %1729 = vrsqrt.f32 %v924_v3 }
 0x882   :  { %1731 = vrsqrt.f32 %v923_v34 }
 0x88b   :  { %v1730_v4 = vpop.eup %1729 }
 0x88c   :  { %v1732_v6 = vpop.eup %1731  ;;  %v928_v7 = vmul.f32 %v1730_v4, %v914_v43 }
 0x88d   :  { %v927_v9 = vmul.f32 %v1732_v6, %v913_v44 }
 0x88e   :  { %v936_v50 = vmul.f32 %v1064_v5, %v928_v7 }
 0x88f   :  { %v935_v14 = vmul.f32 %v1064_v5, %v927_v9 }
 0x890   :  { %v944_v15 = vadd.f32 %v1065_v8, %v936_v50 }
 0x891   :  { %v943_v16 = vadd.f32 %v1065_v8, %v935_v14 }
 0x892   :  { %v946_v18 = vmax.f32 %v944_v15, 0.0 }
 0x893   :  { %v945_v17 = vmax.f32 %v943_v16, 0.0 }
 0x895   :  { %1458 = vmatprep.mubr.f32.mxu1 %v945_v17 }
 0x896   :  { %1459 = vmatmul.mubr.f32.vlgmr.msra.gmra.mrb[6].mxu1 %v946_v18 }
 0x969   :  { %v1460_v20 = vpop.f32.mrb[6].mxu1 }
 0x96a   :  { %v1042_v21 = vadd.f32 %v1460_v20, %v1066_v19  ;;  %v1036_v22 = vpop.f32.mrb[7].mxu1 }
 0x96b   :  { %v1037_v23 = vadd.f32 %v1066_v19, %v1036_v22 }
 0x96c   :  { %1048 = vst [vmem:[%s2445_s21 + $0x18] sm:$0xff] %v1042_v21 }
 0x96d   :  { %1047 = vst [vmem:[%s2445_s21 + $0x8] sm:$0xff] %v1037_v23 }

</bundles_post_ra>
